<compile_context>
chip_gen: v7x
topology: tpu7x:2x2x1
jax: 0.10.0
libtpu: 0.0.40
codegen_flags: <defaults>
</compile_context>

<pallas_src>
import functools
import math

import jax
import jax.numpy as jnp
import numpy as np
from jax.experimental import pallas as pl
from jax.experimental.pallas import tpu as pltpu

LN_EPS = 1e-5


def _layernorm(x, gamma, beta):
    mean = jnp.mean(x, axis=-1, keepdims=True)
    var = jnp.mean((x - mean) ** 2, axis=-1, keepdims=True)
    return (x - mean) * jax.lax.rsqrt(var + LN_EPS) * gamma + beta


def encoder_layer_kernel(
    x_ref, maskb_ref,
    wqkv_ref, bqkv_ref, wo_ref, bo_ref,
    g1_ref, beta1_ref, g2_ref, beta2_ref,
    wff_ref, bff_ref,
    out_ref,
    *, n_heads, d_k, b_blk, seq_len, d_model,
):
    Bb, S, D, H = b_blk, seq_len, d_model, n_heads
    M = Bb * S

    x = x_ref[...].astype(jnp.float32)            # (M, D) rows = (batch, seq) flattened
    mask_bias = maskb_ref[...]                    # (Bb, 1, S): 0 = keep, -1e9 = masked

    # ---- sub-layer 1: z = norm1(src); z = MHA(z, z, z, mask); src = src + z ----
    z = _layernorm(x, g1_ref[...], beta1_ref[...])
    zb = z.astype(jnp.bfloat16)

    # Q/K/V: three full-width (M, D) x (D, D) MXU matmuls; the stacked weight is
    # split on its leading (non-lane) axis so no lane-unaligned slicing occurs.
    # 1/sqrt(d_k) is already folded into wqkv[0] / bqkv[0] at pack time.
    q = jnp.dot(zb, wqkv_ref[0], preferred_element_type=jnp.float32) + bqkv_ref[0]
    k = jnp.dot(zb, wqkv_ref[1], preferred_element_type=jnp.float32) + bqkv_ref[1]
    v = jnp.dot(zb, wqkv_ref[2], preferred_element_type=jnp.float32) + bqkv_ref[2]

    def split_heads(t):                           # (M, D) -> (Bb*H, S, d_k)
        t = t.reshape(Bb, S, H, d_k)
        t = jnp.swapaxes(t, 1, 2)                 # (Bb, H, S, d_k)
        return t.reshape(Bb * H, S, d_k)

    qh = split_heads(q).astype(jnp.bfloat16)
    kh = split_heads(k).astype(jnp.bfloat16)
    vh = split_heads(v).astype(jnp.bfloat16)

    # All heads in ONE batched matmul stream (batch = Bb*H).
    s = jnp.einsum("bqd,bkd->bqk", qh, kh,
                   preferred_element_type=jnp.float32)        # (Bb*H, S, S)
    s = s.reshape(Bb, H, S, S) + mask_bias[:, None, :, :]     # additive mask
    s = s - jnp.max(s, axis=-1, keepdims=True)
    p = jnp.exp(s)                                            # unnormalized probs
    inv = pl.reciprocal(jnp.sum(p, axis=-1, keepdims=True), approx=True)  # (Bb,H,S,1)

    ctx = jnp.einsum("bqk,bkd->bqd",
                     p.reshape(Bb * H, S, S).astype(jnp.bfloat16), vh,
                     preferred_element_type=jnp.float32)      # (Bb*H, S, d_k)
    ctx = ctx * inv.reshape(Bb * H, S, 1)                     # deferred softmax norm
    ctx = jnp.swapaxes(ctx.reshape(Bb, H, S, d_k), 1, 2).reshape(M, D)

    attn_out = jnp.dot(ctx.astype(jnp.bfloat16), wo_ref[...],
                       preferred_element_type=jnp.float32) + bo_ref[...]
    src1 = x + attn_out                           # dropout == identity (eval)

    # ---- sub-layer 2: z = norm2(src); z = relu(ff(z)); src = src + z ----
    z2 = _layernorm(src1, g2_ref[...], beta2_ref[...])
    ff = jnp.maximum(
        jnp.dot(z2.astype(jnp.bfloat16), wff_ref[...],
                preferred_element_type=jnp.float32) + bff_ref[...],
        0.0)

    out_ref[...] = (src1 + ff).astype(out_ref.dtype)


def encoder_layer(x2d, mask_bias, lp, n_heads, *, batch, seq_len, batch_block=None):
    """One EncoderLayer forward via pallas_call on the flattened (B*S, D) slab."""
    BS, D = x2d.shape
    B, S = batch, seq_len
    d_k = D // n_heads

    if batch_block is None:
        # >= 2 grid steps when possible (v7x megacore sharding + DMA overlap).
        batch_block = B // 2 if (B >= 2 and B % 2 == 0) else B
    b_blk = batch_block
    assert B % b_blk == 0, "batch_block must divide batch size"
    M = b_blk * S

    act_spec = pl.BlockSpec((M, D), lambda b: (b, 0))          # lane/sublane-dense 2D slab
    mask_spec = pl.BlockSpec((b_blk, 1, S), lambda b: (b, 0, 0))

    def full_spec(arr):
        # Weights are fetched whole each step (constant index map).
        # NOTE: on v7x with large D one could add pipeline_mode=pl.Buffered(1)
        # to avoid double-buffering the weights; irrelevant at D=64.
        return pl.BlockSpec(arr.shape, lambda b, n=arr.ndim: (0,) * n)

    weights = [lp["wqkv"], lp["bqkv"], lp["wo"], lp["bo"],
               lp["g1"], lp["beta1"], lp["g2"], lp["beta2"],
               lp["wff"], lp["bff"]]

    kernel = functools.partial(
        encoder_layer_kernel,
        n_heads=n_heads, d_k=d_k, b_blk=b_blk, seq_len=S, d_model=D)

    return pl.pallas_call(
        kernel,
        out_shape=jax.ShapeDtypeStruct((BS, D), x2d.dtype),
        grid_spec=pltpu.PrefetchScalarGridSpec(
            num_scalar_prefetch=0,
            grid=(B // b_blk,),
            in_specs=[act_spec, mask_spec] + [full_spec(w) for w in weights],
            out_specs=act_spec),
        compiler_params=pltpu.CompilerParams(dimension_semantics=("parallel",)),
    )(x2d, mask_bias, *weights)


def pack_layer_params(p, n_heads, matmul_dtype=jnp.bfloat16):
    """Stack Q/K/V weights on a leading axis, fold 1/sqrt(d_k) into W_q/b_q,
    and pre-cast matmul weights to bf16 (biases / LN params stay f32)."""
    d_x = p["wq"].shape[0]
    inv_scale = 1.0 / math.sqrt(d_x // n_heads)
    wqkv = jnp.stack([p["wq"] * inv_scale, p["wk"], p["wv"]], axis=0).astype(matmul_dtype)
    bqkv = jnp.stack([p["bq"] * inv_scale, p["bk"], p["bv"]], axis=0)   # (3, 1, D) f32
    return {
        "wqkv": wqkv, "bqkv": bqkv,
        "wo": p["wo"].astype(matmul_dtype), "bo": p["bo"],
        "wff": p["wff"].astype(matmul_dtype), "bff": p["bff"],
        "g1": p["g1"], "beta1": p["beta1"],
        "g2": p["g2"], "beta2": p["beta2"],
    }


def encoder(src, mask, layer_params, n_heads, *, batch_block=None):
    """Pallas forward of the full Encoder (n_layers stacked EncoderLayers)."""
    B, S, D = src.shape
    # Additive mask bias computed once and reused by every layer.
    mask_bias = (mask.astype(jnp.float32) - 1.0) * 1e9      # 0 = keep, -1e9 = masked
    packed = [pack_layer_params(p, n_heads) for p in layer_params]
    x2d = src.reshape(B * S, D)
    for lp in packed:
        x2d = encoder_layer(x2d, mask_bias, lp, n_heads,
                            batch=B, seq_len=S, batch_block=batch_block)
    return x2d.reshape(B, S, D)


def reference_encoder(src, mask, layer_params, n_heads):
    """Pure-JAX f32 mirror of the PyTorch Encoder.forward (eval mode)."""
    B, S, D = src.shape
    d_k = D // n_heads
    scale = math.sqrt(d_k)

    def ln(x, g, b):
        m = x.mean(-1, keepdims=True)
        v = ((x - m) ** 2).mean(-1, keepdims=True)
        return (x - m) / jnp.sqrt(v + LN_EPS) * g + b

    x = src
    for p in layer_params:
        z = ln(x, p["g1"][0], p["beta1"][0])
        q = z @ p["wq"] + p["bq"][0]
        k = z @ p["wk"] + p["bk"][0]
        v = z @ p["wv"] + p["bv"][0]
        q = q.reshape(B, S, n_heads, d_k).transpose(0, 2, 1, 3)
        k = k.reshape(B, S, n_heads, d_k).transpose(0, 2, 1, 3)
        v = v.reshape(B, S, n_heads, d_k).transpose(0, 2, 1, 3)
        scores = jnp.einsum("bhqd,bhkd->bhqk", q, k) / scale
        scores = jnp.where(mask[:, :, None, :] == 0, -1e9, scores)
        attn = jax.nn.softmax(scores, axis=-1)
        ctx = jnp.einsum("bhqk,bhkd->bhqd", attn, v)
        ctx = ctx.transpose(0, 2, 1, 3).reshape(B, S, D)
        x = x + ctx @ p["wo"] + p["bo"][0]
        z2 = ln(x, p["g2"][0], p["beta2"][0])
        x = x + jax.nn.relu(z2 @ p["wff"] + p["bff"][0])
    return x


def make_params(key, d_x):
    """Deterministic synthetic parameters. Linear weights stored as [in, out]
    (already transposed relative to torch's nn.Linear [out, in])."""
    ks = jax.random.split(key, 12)
    s = 1.0 / math.sqrt(d_x)
    return {
        "wq": jax.random.normal(ks[0], (d_x, d_x), jnp.float32) * s,
        "bq": jax.random.normal(ks[1], (1, d_x), jnp.float32) * 0.1,
        "wk": jax.random.normal(ks[2], (d_x, d_x), jnp.float32) * s,
        "bk": jax.random.normal(ks[3], (1, d_x), jnp.float32) * 0.1,
        "wv": jax.random.normal(ks[4], (d_x, d_x), jnp.float32) * s,
        "bv": jax.random.normal(ks[5], (1, d_x), jnp.float32) * 0.1,
        "wo": jax.random.normal(ks[6], (d_x, d_x), jnp.float32) * s,
        "bo": jax.random.normal(ks[7], (1, d_x), jnp.float32) * 0.1,
        "wff": jax.random.normal(ks[8], (d_x, d_x), jnp.float32) * s,
        "bff": jax.random.normal(ks[9], (1, d_x), jnp.float32) * 0.1,
        "g1": 1.0 + 0.1 * jax.random.normal(ks[10], (1, d_x), jnp.float32),
        "beta1": jnp.zeros((1, d_x), jnp.float32),
        "g2": 1.0 + 0.1 * jax.random.normal(ks[11], (1, d_x), jnp.float32),
        "beta2": jnp.zeros((1, d_x), jnp.float32),
    }


if __name__ == "__main__":
    B, S, D, H, N_LAYERS = 4, 16, 64, 4, 2

    key = jax.random.PRNGKey(0)
    keys = jax.random.split(key, 1 + N_LAYERS)
    k_src, k_layers = keys[0], keys[1:]
    src = jax.random.normal(k_src, (B, S, D), jnp.float32)

    # mask: 1 = attend, 0 = masked (shape [B, 1, S], broadcast over query rows).
    mask = jnp.ones((B, 1, S), jnp.float32)
    mask = mask.at[1, 0, S - 3:].set(0.0)
    mask = mask.at[3, 0, :2].set(0.0)

    layer_params = [make_params(k, D) for k in k_layers]

    out = encoder(src, mask, layer_params, H, batch_block=2)
    out = jax.block_until_ready(out)

    ref = reference_encoder(src, mask, layer_params, H)
    # Kernel uses bf16 matmul operands (f32 accumulation) and an approx
    # reciprocal in the softmax, so compare against the f32 reference with a
    # correspondingly relaxed tolerance.
    np.testing.assert_allclose(np.asarray(out), np.asarray(ref), rtol=5e-2, atol=5e-2)

    print("KERNEL_OK")
</pallas_src>

<mosaic_0001>
module attributes {stable_mosaic.version = 11 : i64} {
  func.func @encoder_layer_kernel(%arg0: i32, %arg1: memref<32x64xf32, #tpu.memory_space<vmem>>, %arg2: memref<2x1x16xf32, #tpu.memory_space<vmem>>, %arg3: memref<3x64x64xbf16, #tpu.memory_space<vmem>>, %arg4: memref<3x1x64xf32, #tpu.memory_space<vmem>>, %arg5: memref<64x64xbf16, #tpu.memory_space<vmem>>, %arg6: memref<1x64xf32, #tpu.memory_space<vmem>>, %arg7: memref<1x64xf32, #tpu.memory_space<vmem>>, %arg8: memref<1x64xf32, #tpu.memory_space<vmem>>, %arg9: memref<1x64xf32, #tpu.memory_space<vmem>>, %arg10: memref<1x64xf32, #tpu.memory_space<vmem>>, %arg11: memref<64x64xbf16, #tpu.memory_space<vmem>>, %arg12: memref<1x64xf32, #tpu.memory_space<vmem>>, %arg13: memref<32x64xf32, #tpu.memory_space<vmem>>) attributes {dimension_semantics = [#tpu.dimension_semantics<parallel>], iteration_bounds = array<i64: 2>, scalar_prefetch = 0 : i64, scratch_operands = 0 : i64, tpu.core_type = #tpu.core_type<tc>, window_params = [{transform_indices = @transform_0, window_bounds = array<i64: 32, 64>}, {transform_indices = @transform_1, window_bounds = array<i64: 2, 1, 16>}, {pipeline_mode = #tpu.pipeline_mode<synchronous>, transform_indices = @transform_2, window_bounds = array<i64: 3, 64, 64>}, {pipeline_mode = #tpu.pipeline_mode<synchronous>, transform_indices = @transform_3, window_bounds = array<i64: 3, 1, 64>}, {pipeline_mode = #tpu.pipeline_mode<synchronous>, transform_indices = @transform_4, window_bounds = array<i64: 64, 64>}, {pipeline_mode = #tpu.pipeline_mode<synchronous>, transform_indices = @transform_5, window_bounds = array<i64: 1, 64>}, {pipeline_mode = #tpu.pipeline_mode<synchronous>, transform_indices = @transform_6, window_bounds = array<i64: 1, 64>}, {pipeline_mode = #tpu.pipeline_mode<synchronous>, transform_indices = @transform_7, window_bounds = array<i64: 1, 64>}, {pipeline_mode = #tpu.pipeline_mode<synchronous>, transform_indices = @transform_8, window_bounds = array<i64: 1, 64>}, {pipeline_mode = #tpu.pipeline_mode<synchronous>, transform_indices = @transform_9, window_bounds = array<i64: 1, 64>}, {pipeline_mode = #tpu.pipeline_mode<synchronous>, transform_indices = @transform_10, window_bounds = array<i64: 64, 64>}, {pipeline_mode = #tpu.pipeline_mode<synchronous>, transform_indices = @transform_11, window_bounds = array<i64: 1, 64>}, {transform_indices = @transform_12, window_bounds = array<i64: 32, 64>}]} {
    %c0 = arith.constant 0 : index
    %c0_0 = arith.constant 0 : index
    %0 = vector.load %arg1[%c0, %c0_0] : memref<32x64xf32, #tpu.memory_space<vmem>>, vector<32x64xf32>
    %c0_1 = arith.constant 0 : index
    %c0_2 = arith.constant 0 : index
    %c0_3 = arith.constant 0 : index
    %1 = vector.load %arg2[%c0_1, %c0_2, %c0_3] : memref<2x1x16xf32, #tpu.memory_space<vmem>>, vector<2x1x16xf32>
    %c0_4 = arith.constant 0 : index
    %c0_5 = arith.constant 0 : index
    %2 = vector.load %arg7[%c0_4, %c0_5] : memref<1x64xf32, #tpu.memory_space<vmem>>, vector<1x64xf32>
    %c0_6 = arith.constant 0 : index
    %c0_7 = arith.constant 0 : index
    %3 = vector.load %arg8[%c0_6, %c0_7] : memref<1x64xf32, #tpu.memory_space<vmem>>, vector<1x64xf32>
    %cst = arith.constant dense<0.000000e+00> : vector<32xf32>
    %4 = vector.multi_reduction <add>, %0, %cst [1] : vector<32x64xf32> to vector<32xf32>
    %5 = vector.shape_cast %4 : vector<32xf32> to vector<32x1xf32>
    %cst_8 = arith.constant 6.400000e+01 : f32
    %6 = vector.broadcast %cst_8 : f32 to vector<32x1xf32>
    %7 = arith.divf %5, %6 : vector<32x1xf32>
    %8 = vector.broadcast %7 : vector<32x1xf32> to vector<32x64xf32>
    %9 = arith.subf %0, %8 : vector<32x64xf32>
    %10 = arith.mulf %9, %9 : vector<32x64xf32>
    %cst_9 = arith.constant dense<0.000000e+00> : vector<32xf32>
    %11 = vector.multi_reduction <add>, %10, %cst_9 [1] : vector<32x64xf32> to vector<32xf32>
    %12 = vector.shape_cast %11 : vector<32xf32> to vector<32x1xf32>
    %cst_10 = arith.constant 6.400000e+01 : f32
    %13 = vector.broadcast %cst_10 : f32 to vector<32x1xf32>
    %14 = arith.divf %12, %13 : vector<32x1xf32>
    %15 = vector.broadcast %7 : vector<32x1xf32> to vector<32x64xf32>
    %16 = arith.subf %0, %15 : vector<32x64xf32>
    %cst_11 = arith.constant 9.99999974E-6 : f32
    %17 = vector.broadcast %cst_11 : f32 to vector<32x1xf32>
    %18 = arith.addf %14, %17 : vector<32x1xf32>
    %19 = math.rsqrt %18 : vector<32x1xf32>
    %20 = vector.broadcast %19 : vector<32x1xf32> to vector<32x64xf32>
    %21 = arith.mulf %16, %20 : vector<32x64xf32>
    %22 = vector.broadcast %2 : vector<1x64xf32> to vector<32x64xf32>
    %23 = arith.mulf %21, %22 : vector<32x64xf32>
    %24 = vector.broadcast %3 : vector<1x64xf32> to vector<32x64xf32>
    %25 = arith.addf %23, %24 : vector<32x64xf32>
    %26 = arith.truncf %25 : vector<32x64xf32> to vector<32x64xbf16>
    %c0_12 = arith.constant 0 : index
    %c0_13 = arith.constant 0 : index
    %c0_14 = arith.constant 0 : index
    %27 = vector.load %arg3[%c0_12, %c0_13, %c0_14] : memref<3x64x64xbf16, #tpu.memory_space<vmem>>, vector<1x64x64xbf16>
    %28 = vector.shape_cast %27 : vector<1x64x64xbf16> to vector<64x64xbf16>
    %cst_15 = arith.constant dense<0.000000e+00> : vector<32x64xf32>
    %29 = tpu.matmul %26, %28, %cst_15 {dimension_numbers = #tpu.dot_dimension_numbers<[1], [0], [0], [1], [0, 0, 1, 1], [], []>} : vector<32x64xbf16>, vector<64x64xbf16>, vector<32x64xf32> -> vector<32x64xf32>
    %c0_16 = arith.constant 0 : index
    %c0_17 = arith.constant 0 : index
    %c0_18 = arith.constant 0 : index
    %30 = vector.load %arg4[%c0_16, %c0_17, %c0_18] : memref<3x1x64xf32, #tpu.memory_space<vmem>>, vector<1x1x64xf32>
    %31 = vector.shape_cast %30 : vector<1x1x64xf32> to vector<1x64xf32>
    %32 = vector.broadcast %31 : vector<1x64xf32> to vector<32x64xf32>
    %33 = arith.addf %29, %32 : vector<32x64xf32>
    %c1 = arith.constant 1 : index
    %c0_19 = arith.constant 0 : index
    %c0_20 = arith.constant 0 : index
    %34 = vector.load %arg3[%c1, %c0_19, %c0_20] : memref<3x64x64xbf16, #tpu.memory_space<vmem>>, vector<1x64x64xbf16>
    %35 = vector.shape_cast %34 : vector<1x64x64xbf16> to vector<64x64xbf16>
    %cst_21 = arith.constant dense<0.000000e+00> : vector<32x64xf32>
    %36 = tpu.matmul %26, %35, %cst_21 {dimension_numbers = #tpu.dot_dimension_numbers<[1], [0], [0], [1], [0, 0, 1, 1], [], []>} : vector<32x64xbf16>, vector<64x64xbf16>, vector<32x64xf32> -> vector<32x64xf32>
    %c1_22 = arith.constant 1 : index
    %c0_23 = arith.constant 0 : index
    %c0_24 = arith.constant 0 : index
    %37 = vector.load %arg4[%c1_22, %c0_23, %c0_24] : memref<3x1x64xf32, #tpu.memory_space<vmem>>, vector<1x1x64xf32>
    %38 = vector.shape_cast %37 : vector<1x1x64xf32> to vector<1x64xf32>
    %39 = vector.broadcast %38 : vector<1x64xf32> to vector<32x64xf32>
    %40 = arith.addf %36, %39 : vector<32x64xf32>
    %c2 = arith.constant 2 : index
    %c0_25 = arith.constant 0 : index
    %c0_26 = arith.constant 0 : index
    %41 = vector.load %arg3[%c2, %c0_25, %c0_26] : memref<3x64x64xbf16, #tpu.memory_space<vmem>>, vector<1x64x64xbf16>
    %42 = vector.shape_cast %41 : vector<1x64x64xbf16> to vector<64x64xbf16>
    %cst_27 = arith.constant dense<0.000000e+00> : vector<32x64xf32>
    %43 = tpu.matmul %26, %42, %cst_27 {dimension_numbers = #tpu.dot_dimension_numbers<[1], [0], [0], [1], [0, 0, 1, 1], [], []>} : vector<32x64xbf16>, vector<64x64xbf16>, vector<32x64xf32> -> vector<32x64xf32>
    %c2_28 = arith.constant 2 : index
    %c0_29 = arith.constant 0 : index
    %c0_30 = arith.constant 0 : index
    %44 = vector.load %arg4[%c2_28, %c0_29, %c0_30] : memref<3x1x64xf32, #tpu.memory_space<vmem>>, vector<1x1x64xf32>
    %45 = vector.shape_cast %44 : vector<1x1x64xf32> to vector<1x64xf32>
    %46 = vector.broadcast %45 : vector<1x64xf32> to vector<32x64xf32>
    %47 = arith.addf %43, %46 : vector<32x64xf32>
    %48 = vector.shape_cast %33 : vector<32x64xf32> to vector<2x16x4x16xf32>
    %49 = tpu.transpose %48, [0, 2, 1, 3] : vector<2x16x4x16xf32> -> vector<2x4x16x16xf32>
    %50 = vector.shape_cast %49 : vector<2x4x16x16xf32> to vector<8x16x16xf32>
    %51 = arith.truncf %50 : vector<8x16x16xf32> to vector<8x16x16xbf16>
    %52 = vector.shape_cast %40 : vector<32x64xf32> to vector<2x16x4x16xf32>
    %53 = tpu.transpose %52, [0, 2, 1, 3] : vector<2x16x4x16xf32> -> vector<2x4x16x16xf32>
    %54 = vector.shape_cast %53 : vector<2x4x16x16xf32> to vector<8x16x16xf32>
    %55 = arith.truncf %54 : vector<8x16x16xf32> to vector<8x16x16xbf16>
    %56 = vector.shape_cast %47 : vector<32x64xf32> to vector<2x16x4x16xf32>
    %57 = tpu.transpose %56, [0, 2, 1, 3] : vector<2x16x4x16xf32> -> vector<2x4x16x16xf32>
    %58 = vector.shape_cast %57 : vector<2x4x16x16xf32> to vector<8x16x16xf32>
    %59 = arith.truncf %58 : vector<8x16x16xf32> to vector<8x16x16xbf16>
    "tpu.trace_start"() <{level = 10 : i32, message = "bqd,bkd->bqk"}> : () -> ()
    %cst_31 = arith.constant dense<0.000000e+00> : vector<8x16x16xf32>
    %60 = tpu.matmul %51, %55, %cst_31 {dimension_numbers = #tpu.dot_dimension_numbers<[2], [2], [1], [1], [0, 0, 0, 1, 1, 1], [0], [0]>} : vector<8x16x16xbf16>, vector<8x16x16xbf16>, vector<8x16x16xf32> -> vector<8x16x16xf32>
    "tpu.trace_stop"() : () -> ()
    %61 = vector.shape_cast %60 : vector<8x16x16xf32> to vector<2x4x16x16xf32>
    %62 = vector.shape_cast %1 : vector<2x1x16xf32> to vector<2x1x1x16xf32>
    %63 = vector.broadcast %62 : vector<2x1x1x16xf32> to vector<2x4x16x16xf32>
    %64 = arith.addf %61, %63 : vector<2x4x16x16xf32>
    %cst_32 = arith.constant dense<0xFF800000> : vector<2x4x16xf32>
    %65 = vector.multi_reduction <maximumf>, %64, %cst_32 [3] : vector<2x4x16x16xf32> to vector<2x4x16xf32>
    %66 = vector.shape_cast %65 : vector<2x4x16xf32> to vector<2x4x16x1xf32>
    %67 = vector.broadcast %66 : vector<2x4x16x1xf32> to vector<2x4x16x16xf32>
    %68 = arith.subf %64, %67 : vector<2x4x16x16xf32>
    %69 = math.exp %68 : vector<2x4x16x16xf32>
    %cst_33 = arith.constant dense<0.000000e+00> : vector<2x4x16xf32>
    %70 = vector.multi_reduction <add>, %69, %cst_33 [3] : vector<2x4x16x16xf32> to vector<2x4x16xf32>
    %71 = vector.shape_cast %70 : vector<2x4x16xf32> to vector<2x4x16x1xf32>
    %72 = tpu.reciprocal %71 {approx = true} : vector<2x4x16x1xf32> -> vector<2x4x16x1xf32>
    %73 = vector.shape_cast %69 : vector<2x4x16x16xf32> to vector<8x16x16xf32>
    %74 = arith.truncf %73 : vector<8x16x16xf32> to vector<8x16x16xbf16>
    "tpu.trace_start"() <{level = 10 : i32, message = "bqk,bkd->bqd"}> : () -> ()
    %cst_34 = arith.constant dense<0.000000e+00> : vector<8x16x16xf32>
    %75 = tpu.matmul %74, %59, %cst_34 {dimension_numbers = #tpu.dot_dimension_numbers<[2], [1], [1], [2], [0, 0, 0, 1, 1, 2], [0], [0]>} : vector<8x16x16xbf16>, vector<8x16x16xbf16>, vector<8x16x16xf32> -> vector<8x16x16xf32>
    "tpu.trace_stop"() : () -> ()
    %76 = vector.shape_cast %72 : vector<2x4x16x1xf32> to vector<8x16x1xf32>
    %77 = vector.broadcast %76 : vector<8x16x1xf32> to vector<8x16x16xf32>
    %78 = arith.mulf %75, %77 : vector<8x16x16xf32>
    %79 = vector.shape_cast %78 : vector<8x16x16xf32> to vector<2x4x16x16xf32>
    %80 = tpu.transpose %79, [0, 2, 1, 3] : vector<2x4x16x16xf32> -> vector<2x16x4x16xf32>
    %81 = vector.shape_cast %80 : vector<2x16x4x16xf32> to vector<32x64xf32>
    %82 = arith.truncf %81 : vector<32x64xf32> to vector<32x64xbf16>
    %c0_35 = arith.constant 0 : index
    %c0_36 = arith.constant 0 : index
    %83 = vector.load %arg5[%c0_35, %c0_36] : memref<64x64xbf16, #tpu.memory_space<vmem>>, vector<64x64xbf16>
    %cst_37 = arith.constant dense<0.000000e+00> : vector<32x64xf32>
    %84 = tpu.matmul %82, %83, %cst_37 {dimension_numbers = #tpu.dot_dimension_numbers<[1], [0], [0], [1], [0, 0, 1, 1], [], []>} : vector<32x64xbf16>, vector<64x64xbf16>, vector<32x64xf32> -> vector<32x64xf32>
    %c0_38 = arith.constant 0 : index
    %c0_39 = arith.constant 0 : index
    %85 = vector.load %arg6[%c0_38, %c0_39] : memref<1x64xf32, #tpu.memory_space<vmem>>, vector<1x64xf32>
    %86 = vector.broadcast %85 : vector<1x64xf32> to vector<32x64xf32>
    %87 = arith.addf %84, %86 : vector<32x64xf32>
    %88 = arith.addf %0, %87 : vector<32x64xf32>
    %c0_40 = arith.constant 0 : index
    %c0_41 = arith.constant 0 : index
    %89 = vector.load %arg9[%c0_40, %c0_41] : memref<1x64xf32, #tpu.memory_space<vmem>>, vector<1x64xf32>
    %c0_42 = arith.constant 0 : index
    %c0_43 = arith.constant 0 : index
    %90 = vector.load %arg10[%c0_42, %c0_43] : memref<1x64xf32, #tpu.memory_space<vmem>>, vector<1x64xf32>
    %cst_44 = arith.constant dense<0.000000e+00> : vector<32xf32>
    %91 = vector.multi_reduction <add>, %88, %cst_44 [1] : vector<32x64xf32> to vector<32xf32>
    %92 = vector.shape_cast %91 : vector<32xf32> to vector<32x1xf32>
    %cst_45 = arith.constant 6.400000e+01 : f32
    %93 = vector.broadcast %cst_45 : f32 to vector<32x1xf32>
    %94 = arith.divf %92, %93 : vector<32x1xf32>
    %95 = vector.broadcast %94 : vector<32x1xf32> to vector<32x64xf32>
    %96 = arith.subf %88, %95 : vector<32x64xf32>
    %97 = arith.mulf %96, %96 : vector<32x64xf32>
    %cst_46 = arith.constant dense<0.000000e+00> : vector<32xf32>
    %98 = vector.multi_reduction <add>, %97, %cst_46 [1] : vector<32x64xf32> to vector<32xf32>
    %99 = vector.shape_cast %98 : vector<32xf32> to vector<32x1xf32>
    %cst_47 = arith.constant 6.400000e+01 : f32
    %100 = vector.broadcast %cst_47 : f32 to vector<32x1xf32>
    %101 = arith.divf %99, %100 : vector<32x1xf32>
    %102 = vector.broadcast %94 : vector<32x1xf32> to vector<32x64xf32>
    %103 = arith.subf %88, %102 : vector<32x64xf32>
    %cst_48 = arith.constant 9.99999974E-6 : f32
    %104 = vector.broadcast %cst_48 : f32 to vector<32x1xf32>
    %105 = arith.addf %101, %104 : vector<32x1xf32>
    %106 = math.rsqrt %105 : vector<32x1xf32>
    %107 = vector.broadcast %106 : vector<32x1xf32> to vector<32x64xf32>
    %108 = arith.mulf %103, %107 : vector<32x64xf32>
    %109 = vector.broadcast %89 : vector<1x64xf32> to vector<32x64xf32>
    %110 = arith.mulf %108, %109 : vector<32x64xf32>
    %111 = vector.broadcast %90 : vector<1x64xf32> to vector<32x64xf32>
    %112 = arith.addf %110, %111 : vector<32x64xf32>
    %113 = arith.truncf %112 : vector<32x64xf32> to vector<32x64xbf16>
    %c0_49 = arith.constant 0 : index
    %c0_50 = arith.constant 0 : index
    %114 = vector.load %arg11[%c0_49, %c0_50] : memref<64x64xbf16, #tpu.memory_space<vmem>>, vector<64x64xbf16>
    %cst_51 = arith.constant dense<0.000000e+00> : vector<32x64xf32>
    %115 = tpu.matmul %113, %114, %cst_51 {dimension_numbers = #tpu.dot_dimension_numbers<[1], [0], [0], [1], [0, 0, 1, 1], [], []>} : vector<32x64xbf16>, vector<64x64xbf16>, vector<32x64xf32> -> vector<32x64xf32>
    %c0_52 = arith.constant 0 : index
    %c0_53 = arith.constant 0 : index
    %116 = vector.load %arg12[%c0_52, %c0_53] : memref<1x64xf32, #tpu.memory_space<vmem>>, vector<1x64xf32>
    %117 = vector.broadcast %116 : vector<1x64xf32> to vector<32x64xf32>
    %118 = arith.addf %115, %117 : vector<32x64xf32>
    %cst_54 = arith.constant 0.000000e+00 : f32
    %119 = vector.broadcast %cst_54 : f32 to vector<32x64xf32>
    %120 = arith.maximumf %118, %119 : vector<32x64xf32>
    %121 = arith.addf %88, %120 : vector<32x64xf32>
    %c0_55 = arith.constant 0 : index
    %c0_56 = arith.constant 0 : index
    %122 = vector.load %arg13[%c0_55, %c0_56] : memref<32x64xf32, #tpu.memory_space<vmem>>, vector<32x64xf32>
    tpu.vector_store %arg13[%c0_55, %c0_56], %121 {strides = array<i32>} : memref<32x64xf32, #tpu.memory_space<vmem>>, vector<32x64xf32>,
    return
  }
  func.func @transform_0(%arg0: i32) -> (i32, i32) {
    %c0_i32 = arith.constant 0 : i32
    %c0_i32_0 = arith.constant 0 : i32
    return %arg0, %c0_i32 : i32, i32
  }
  func.func @transform_1(%arg0: i32) -> (i32, i32, i32) {
    %c0_i32 = arith.constant 0 : i32
    %c0_i32_0 = arith.constant 0 : i32
    %c0_i32_1 = arith.constant 0 : i32
    return %arg0, %c0_i32, %c0_i32_0 : i32, i32, i32
  }
  func.func @transform_2(%arg0: i32) -> (i32, i32, i32) {
    %c0_i32 = arith.constant 0 : i32
    %c0_i32_0 = arith.constant 0 : i32
    %c0_i32_1 = arith.constant 0 : i32
    %c0_i32_2 = arith.constant 0 : i32
    return %c0_i32, %c0_i32_0, %c0_i32_1 : i32, i32, i32
  }
  func.func @transform_3(%arg0: i32) -> (i32, i32, i32) {
    %c0_i32 = arith.constant 0 : i32
    %c0_i32_0 = arith.constant 0 : i32
    %c0_i32_1 = arith.constant 0 : i32
    %c0_i32_2 = arith.constant 0 : i32
    return %c0_i32, %c0_i32_0, %c0_i32_1 : i32, i32, i32
  }
  func.func @transform_4(%arg0: i32) -> (i32, i32) {
    %c0_i32 = arith.constant 0 : i32
    %c0_i32_0 = arith.constant 0 : i32
    %c0_i32_1 = arith.constant 0 : i32
    return %c0_i32, %c0_i32_0 : i32, i32
  }
  func.func @transform_5(%arg0: i32) -> (i32, i32) {
    %c0_i32 = arith.constant 0 : i32
    %c0_i32_0 = arith.constant 0 : i32
    %c0_i32_1 = arith.constant 0 : i32
    return %c0_i32, %c0_i32_0 : i32, i32
  }
  func.func @transform_6(%arg0: i32) -> (i32, i32) {
    %c0_i32 = arith.constant 0 : i32
    %c0_i32_0 = arith.constant 0 : i32
    %c0_i32_1 = arith.constant 0 : i32
    return %c0_i32, %c0_i32_0 : i32, i32
  }
  func.func @transform_7(%arg0: i32) -> (i32, i32) {
    %c0_i32 = arith.constant 0 : i32
    %c0_i32_0 = arith.constant 0 : i32
    %c0_i32_1 = arith.constant 0 : i32
    return %c0_i32, %c0_i32_0 : i32, i32
  }
  func.func @transform_8(%arg0: i32) -> (i32, i32) {
    %c0_i32 = arith.constant 0 : i32
    %c0_i32_0 = arith.constant 0 : i32
    %c0_i32_1 = arith.constant 0 : i32
    return %c0_i32, %c0_i32_0 : i32, i32
  }
  func.func @transform_9(%arg0: i32) -> (i32, i32) {
    %c0_i32 = arith.constant 0 : i32
    %c0_i32_0 = arith.constant 0 : i32
    %c0_i32_1 = arith.constant 0 : i32
    return %c0_i32, %c0_i32_0 : i32, i32
  }
  func.func @transform_10(%arg0: i32) -> (i32, i32) {
    %c0_i32 = arith.constant 0 : i32
    %c0_i32_0 = arith.constant 0 : i32
    %c0_i32_1 = arith.constant 0 : i32
    return %c0_i32, %c0_i32_0 : i32, i32
  }
  func.func @transform_11(%arg0: i32) -> (i32, i32) {
    %c0_i32 = arith.constant 0 : i32
    %c0_i32_0 = arith.constant 0 : i32
    %c0_i32_1 = arith.constant 0 : i32
    return %c0_i32, %c0_i32_0 : i32, i32
  }
  func.func @transform_12(%arg0: i32) -> (i32, i32) {
    %c0_i32 = arith.constant 0 : i32
    %c0_i32_0 = arith.constant 0 : i32
    return %arg0, %c0_i32 : i32, i32
  }
}

</mosaic_0001>

<bundles_post_ra>
// kernel: tpu_custom_call.1
= control target key start
LH: loop header
LB: loop body
LE: loop exit
PB: predicated region body
PF: predicated region fallthrough
CT: control target
= control target key end

     0   :  { %s7039_s0 = inlined_call_operand.hbm [shape: f32[64,64], index: 0, kind: input, shape index: {}]   ;;  %s7040_s1 = inlined_call_operand.hbm [shape: f32[4,1,16], index: 1, kind: input, shape index: {}]   ;;  %s7041_s2 = inlined_call_operand.hbm [shape: bf16[3,64,64], index: 2, kind: input, shape index: {}]   ;;  %s7042_s3 = inlined_call_operand.vmem [shape: f32[3,1,64], index: 3, kind: input, shape index: {}]   ;;  %s7043_s4 = inlined_call_operand.hbm [shape: bf16[64,64], index: 4, kind: input, shape index: {}]   ;;  %s7044_s5 = inlined_call_operand.vmem [shape: f32[1,64], index: 5, kind: input, shape index: {}]   ;;  %s7045_s6 = inlined_call_operand.vmem [shape: f32[1,64], index: 6, kind: input, shape index: {}]   ;;  %s7046_s7 = inlined_call_operand.hbm [shape: f32[1,64], index: 7, kind: input, shape index: {}]   ;;  %s7047_s8 = inlined_call_operand.hbm [shape: f32[1,64], index: 8, kind: input, shape index: {}]   ;;  %s7048_s9 = inlined_call_operand.hbm [shape: f32[1,64], index: 9, kind: input, shape index: {}]   ;;  %s7049_s10 = inlined_call_operand.vmem [shape: bf16[64,64], index: 10, kind: input, shape index: {}]   ;;  %s7050_s11 = inlined_call_operand.vmem [shape: f32[1,64], index: 11, kind: input, shape index: {}]   ;;  %s7051_s12 = inlined_call_operand.hbm [shape: f32[64,64], index: 12, kind: output, shape index: {}]  }
   0x1   :  { %7057 = sst [smem:[#allocation21_spill]] %s7039_s0 }
   0x2   :  { %7058 = sst [smem:[#allocation22_spill]] %s7041_s2 }
   0x3   :  { %7059 = sst [smem:[#allocation23_spill]] %s7043_s4 }
   0x4   :  { %7060 = sst [smem:[#allocation24_spill]] %s7044_s5 }
   0x5   :  { %7061 = sst [smem:[#allocation25_spill]] %s7046_s7 }
   0x6   :  { %7062 = sst [smem:[#allocation26_spill]] %s7047_s8 }
   0x7   :  { %7063 = sst [smem:[#allocation27_spill]] %s7048_s9 }
   0x8   :  { %7064 = sst [smem:[#allocation28_spill]] %s7049_s10 }
   0x9   :  { %7065 = sst [smem:[#allocation29_spill]] %s7050_s11 }
   0xa   :  { %7066 = sst [smem:[#allocation30_spill]] %s7051_s12 }
   0xb   :  { %17 = vsyncpa [#allocation3], 0 }
   0xc   :  { %19 = vsyncpa [#allocation3 + $0x1], 0 }
   0xd   :  { %20 = vsyncpa [#allocation6], 0 }
   0xe   :  { %22 = vsyncpa [#allocation6 + $0x1], 0 }
   0xf   :  { %23 = vsyncpa [#allocation9], 0 }
  0x10   :  { %24 = vsyncpa [#allocation12], 0 }
  0x11   :  { %25 = vsyncpa [#allocation4], 0 }
  0x12   :  { %27 = vsyncpa [#allocation4 + $0x1], 0  ;;  %s5631_s21 = smov 0   ;;  %s5633_s22 = smov 0  }
  0x13   :  { %s5635_s23 = smov 0   ;;  %s5637_s24 = smov 0  }
  0x14 LB: > { %s5540_s25 = smov [#allocation7]   ;;  %s5652_s27 = sadd.s32 4294967295, %s5538_s24   ;;  %s5538_s24 = sphi %s5637_s24, %s7099_s24   ;;  %s5534_s23 = sphi %s5635_s23, %s7098_s23   ;;  %s5530_s22 = sphi %s5633_s22, %s7097_s22   ;;  %s5526_s21 = sphi %s5631_s21, %s7096_s21  }
  0x15   : > { %s338_s26 = sshll.u32 %s5540_s25, 4  ;;  %p4663_p0 = scmp.ge.s32.totalorder %s5538_s24, 1  ;;  %s5657_s26 = int_to_ptr.vmem [resolvable:$true] %s338_s26 }
  0x16   : > { %p7054_p1 = scmp.eq.s32.totalorder %s5652_s27, 0  ;;  %p326_p2 = scmp.lt.s32.totalorder %s5538_s24, 3 }
  0x17   : > { %s5541_s29 = smov [#allocation8]   ;;  %s5542_s14 = smov [#allocation11]  }
  0x18   : > { %p5659_p3 = pnand %p4663_p0, %p326_p2  ;;  %s354_s30 = sshll.u32 %s5541_s29, 4  ;;  %s5672_s30 = int_to_ptr.vmem [resolvable:$true] %s354_s30 }
  0x19   : > { %s385_s15 = sshll.u32 %s5542_s14, 4  ;;  %s7069_s2 = sld [smem:[#allocation22_spill]]  ;;  %s5674_s15 = int_to_ptr.vmem [resolvable:$true] %s385_s15 }
  0x1a   : > { %s7067_s28 = scalar_select %p5659_p3, 1, 0 }
  0x1b   : > { %p5028_p5 = pneg %p5659_p3 }
  0x1d   : > { %p5668_p6 = pnand %p5028_p5, %p7054_p1 }
  0x1f   : > { %s5256_s18 = scalar_lea.hbm %s7069_s2, 1536  ;;  %p5684_p8 = pneg %p5668_p6 }
  0x20   : > { %p5257_p7 = scmp.ne.s32.totalorder %s7069_s2, %s5256_s18  ;;  %p5263_p11 = scmp.lt.u32.totalorder %s5256_s18, %s7069_s2 }
  0x22   : > { %p5259_p9 = pnand %p5684_p8, %p5257_p7 }
  0x24   : > { %p5260_p10 = pneg %p5259_p9 }
  0x26   : > { %p5265_p12 = pnand %p5263_p11, %p5260_p10 }
  0x28   : > { %5268 = shalt.err (!%p5265_p12)
}
  0x29   : > { %s5269_s16 = scalar_lea.vmem %s5657_s26, 1536  ;;  %p5277_p5 = scmp.lt.s32.totalorder %s5657_s26, %s5657_s26 }
  0x2a   : > { %p5270_p13 = scmp.ne.s32.totalorder %s5657_s26, %s5269_s16  ;;  %p5278_p4 = scmp.lt.s32.totalorder %s5269_s16, %s5269_s16 }
  0x2c   : > { %p5272_p0 = pnand %p5270_p13, %p5684_p8  ;;  %p5279_p7 = por %p5278_p4, %p5277_p5 }
  0x2e   : > { %p5273_p2 = pneg %p5272_p0 }
  0x30   : > { %p5280_p9 = pnand %p5279_p7, %p5273_p2 }
  0x32   : > { %5283 = shalt.err (!%p5280_p9)
}
  0x33   : > { %s5543_s17 = smov 64   ;;  %s5544_s18 = smov 4  }
  0x34   : > { %5031 = dma.hbm_to_vmem [thread:$0]  (!%p5668_p6), %s7069_s2, 1536, %s5657_s26, [#allocation6], %s5543_s17, %s5543_s17, %s5544_s18  }
  0x35   : > { %s7071_s4 = sld [smem:[#allocation23_spill]] }
  0x3b   : > { %s5284_s12 = scalar_lea.hbm %s7071_s4, 512 }
  0x3c   : > { %p5285_p4 = scmp.ne.s32.totalorder %s7071_s4, %s5284_s12  ;;  %p5291_p12 = scmp.lt.u32.totalorder %s5284_s12, %s7071_s4 }
  0x3e   : > { %p5287_p10 = pnand %p5285_p4, %p5684_p8 }
  0x40   : > { %p5288_p11 = pneg %p5287_p10 }
  0x42   : > { %p5293_p13 = pnand %p5291_p12, %p5288_p11 }
  0x44   : > { %5296 = shalt.err (!%p5293_p13)
}
  0x45   : > { %s5297_s26 = scalar_lea.vmem %s5672_s30, 512  ;;  %p5305_p7 = scmp.lt.s32.totalorder %s5672_s30, %s5672_s30 }
  0x46   : > { %p5298_p0 = scmp.ne.s32.totalorder %s5672_s30, %s5297_s26  ;;  %p5306_p9 = scmp.lt.s32.totalorder %s5297_s26, %s5297_s26 }
  0x48   : > { %p5300_p2 = pnand %p5298_p0, %p5684_p8  ;;  %p5307_p4 = por %p5306_p9, %p5305_p7 }
  0x4a   : > { %p5301_p5 = pneg %p5300_p2 }
  0x4c   : > { %p5308_p10 = pnand %p5307_p4, %p5301_p5 }
  0x4e   : > { %5311 = shalt.err (!%p5308_p10)
}
  0x4f   : > { %5034 = dma.hbm_to_vmem [thread:$0]  (!%p5668_p6), %s7071_s4, 512, %s5672_s30, [#allocation9], %s5543_s17, %s5543_s17, %s5544_s18  }
  0x50   : > { %s7072_s8 = sld [smem:[#allocation26_spill]] }
  0x56   : > { %s5312_s19 = scalar_lea.hbm %s7072_s8, 16 }
  0x57   : > { %p5313_p11 = scmp.ne.s32.totalorder %s7072_s8, %s5312_s19  ;;  %p5319_p0 = scmp.lt.u32.totalorder %s5312_s19, %s7072_s8 }
  0x59   : > { %p5315_p12 = pnand %p5313_p11, %p5684_p8 }
  0x5b   : > { %p5316_p13 = pneg %p5315_p12 }
  0x5d   : > { %p5321_p2 = pnand %p5319_p0, %p5316_p13 }
  0x5f   : > { %5324 = shalt.err (!%p5321_p2)
}
  0x60   : > { %s5325_s30 = scalar_lea.vmem %s5674_s15, 16  ;;  %s5332_s17 = scalar_lea.vmem %s5674_s15, 32 }
  0x61   : > { %p5326_p5 = scmp.ne.s32.totalorder %s5674_s15, %s5325_s30  ;;  %p5333_p4 = scmp.lt.s32.totalorder %s5674_s15, %s5674_s15 }
  0x62   : > { %p5334_p10 = scmp.lt.s32.totalorder %s5332_s17, %s5325_s30 }
  0x63   : > { %p5328_p7 = pnand %p5326_p5, %p5684_p8 }
  0x64   : > { %p5335_p11 = por %p5334_p10, %p5333_p4 }
  0x65   : > { %p5329_p9 = pneg %p5328_p7 }
  0x67   : > { %p5336_p12 = pnand %p5335_p11, %p5329_p9 }
  0x69   : > { %5339 = shalt.err (!%p5336_p12)
}
  0x6a   : > { %5040 = dma.hbm_to_vmem [thread:$0]  (!%p5668_p6), %s7072_s8, 16, %s5674_s15, [#allocation12]  }
  0x6b   : > { %s5545_s5 = smov [#allocation10]   ;;  %s5546_s11 = smov [#allocation13]  }
  0x6c   : > { %s374_s10 = sshll.u32 %s5545_s5, 4  ;;  %s396_s12 = sshll.u32 %s5546_s11, 4  ;;  %s375_s10 = int_to_ptr.vmem [resolvable:$true] %s374_s10  ;;  %s397_s12 = int_to_ptr.vmem [resolvable:$true] %s396_s12 }
  0x6d   : > { %s7073_s7 = sld [smem:[#allocation25_spill]] }
  0x73   : > { %s5340_s29 = scalar_lea.hbm %s7073_s7, 16 }
  0x74   : > { %p5341_p13 = scmp.ne.s32.totalorder %s7073_s7, %s5340_s29  ;;  %p5347_p5 = scmp.lt.u32.totalorder %s5340_s29, %s7073_s7 }
  0x76   : > { %p5343_p0 = pnand %p5341_p13, %p5684_p8 }
  0x78   : > { %p5344_p2 = pneg %p5343_p0 }
  0x7a   : > { %p5349_p7 = pnand %p5347_p5, %p5344_p2 }
  0x7c   : > { %5352 = shalt.err (!%p5349_p7)
}
  0x7d   : > { %s5353_s15 = scalar_lea.vmem %s375_s10, 16  ;;  %s5360_s18 = scalar_lea.vmem %s375_s10, 32 }
  0x7e   : > { %p5354_p9 = scmp.ne.s32.totalorder %s375_s10, %s5353_s15  ;;  %p5361_p11 = scmp.lt.s32.totalorder %s375_s10, %s375_s10 }
  0x7f   : > { %p5362_p12 = scmp.lt.s32.totalorder %s5360_s18, %s5353_s15 }
  0x80   : > { %p5356_p4 = pnand %p5354_p9, %p5684_p8 }
  0x81   : > { %p5363_p1 = por %p5362_p12, %p5361_p11 }
  0x82   : > { %p5357_p10 = pneg %p5356_p4 }
  0x84   : > { %p5364_p3 = pnand %p5363_p1, %p5357_p10 }
  0x86   : > { %5367 = shalt.err (!%p5364_p3)
}
  0x87   : > { %5037 = dma.hbm_to_vmem [thread:$0]  (!%p5668_p6), %s7073_s7, 16, %s375_s10, [#allocation9]  }
  0x88   : > { %s7074_s9 = sld [smem:[#allocation27_spill]] }
  0x8e   : > { %s5368_s20 = scalar_lea.hbm %s7074_s9, 16 }
  0x8f   : > { %p5369_p13 = scmp.ne.s32.totalorder %s7074_s9, %s5368_s20  ;;  %p5375_p3 = scmp.lt.u32.totalorder %s5368_s20, %s7074_s9 }
  0x91   : > { %p5371_p0 = pnand %p5369_p13, %p5684_p8 }
  0x93   : > { %p5372_p1 = pneg %p5371_p0 }
  0x95   : > { %p5377_p2 = pnand %p5375_p3, %p5372_p1 }
  0x97   : > { %5380 = shalt.err (!%p5377_p2)
}
  0x98   : > { %s5381_s17 = scalar_lea.vmem %s397_s12, 16  ;;  %s5388_s10 = scalar_lea.vmem %s397_s12, 32 }
  0x99   : > { %p5382_p5 = scmp.ne.s32.totalorder %s397_s12, %s5381_s17  ;;  %p5389_p4 = scmp.lt.s32.totalorder %s397_s12, %s397_s12 }
  0x9a   : > { %p5390_p10 = scmp.lt.s32.totalorder %s5388_s10, %s5381_s17 }
  0x9b   : > { %p5384_p7 = pnand %p5382_p5, %p5684_p8 }
  0x9c   : > { %p5391_p11 = por %p5390_p10, %p5389_p4 }
  0x9d   : > { %p5385_p9 = pneg %p5384_p7 }
  0x9f   : > { %p5392_p12 = pnand %p5391_p11, %p5385_p9 }
  0xa1   : > { %5395 = shalt.err (!%p5392_p12)
}
  0xa2   : > { %5043 = dma.hbm_to_vmem [thread:$0]  (!%p5668_p6), %s7074_s9, 16, %s397_s12, [#allocation12]  }
  0xa3   : > { %s4662_s25 = sadd.s32 4294967294, %s5538_s24   ;;  %s5790_s13 = sadd.s32 1, %s5538_s24  }
  0xa4   : > { %s40_s26 = sadd.s32 1, %s5534_s23  ;;  %s37_s5 = ssub.s32 %s5538_s24, %s5790_s13 }
  0xa5   : > { %p47_p8 = scmp.ne.s32.totalorder %s5534_s23, %s5530_s22  ;;  %p38_p13 = scmp.eq.s32.totalorder %s37_s5, 0 }
  0xa6   : > { %p48_p0 = scmp.eq.s32.totalorder %s5538_s24, 0  ;;  %p53_p1 = scmp.ne.s32.totalorder %s5530_s22, %s5526_s21 }
  0xa7   : > { %p313_p3 = scmp.eq.s32.totalorder %s5652_s27, 1  ;;  %p7075_p5 = scmp.eq.s32.totalorder %s5652_s27, 0 }
  0xa8   : > { %s5802_s11 = scalar_select %p38_p13, %s5534_s23, %s40_s26  }
  0xa9   : > { %p49_p2 = por %p48_p0, %p47_p8  ;;  %p5806_p7 = por %p7075_p5, %p53_p1 }
  0xaa   : > { %p5810_p6 = por %p313_p3, %p47_p8  ;;  %p319_p9 = scmp.eq.s32.totalorder %s4662_s25, 1 }
  0xab   : > { %p5060_p4 = scmp.lt.s32.totalorder %s5538_s24, 2  ;;  %s5816_s20 = sand.u32 1, %s5534_s23  }
  0xac   : > { %s7077_s12 = scalar_select %p5810_p6, 1, 0 }
  0xad   : > { %p5818_p10 = por %p319_p9, %p53_p1  ;;  %s4670_s14 = sshll.u32 %s5816_s20, 5 }
  0xae   : > { %s4781_s16 = sshll.u32 %s5538_s24, 9  ;;  %s7079_s0 = sld [smem:[#allocation21_spill]] }
  0xaf   : > { %s7078_s29 = scalar_select %p5818_p10, 1, 0 }
  0xb0   : > { %s417_s15 = scalar_lea.vmem [#allocation2], %s4670_s14  ;;  %p5829_p11 = pnand %p5060_p4, %p49_p2 }
  0xb1   : > { %s424_s18 = sshll.u32 %s417_s15, 4  ;;  %s5833_s18 = int_to_ptr.vmem [resolvable:$true] %s424_s18 }
  0xb2   : > { %p5398_p8 = pneg %p5829_p11 }
  0xb4   : > { %s5827_s10 = scalar_lea.hbm %s7079_s0, %s4781_s16  ;;  %s5401_s30 = scalar_lea.hbm %s7079_s0, 1024 }
  0xb5   : > { %s5396_s5 = scalar_lea.hbm %s5827_s10, 512  ;;  %p5402_p1 = scmp.lt.u32.totalorder %s5827_s10, %s7079_s0 }
  0xb6   : > { %p5397_p12 = scmp.ne.s32.totalorder %s5827_s10, %s5396_s5  ;;  %p5403_p3 = scmp.lt.u32.totalorder %s5401_s30, %s5396_s5 }
  0xb7   : > { %p5405_p5 = scmp.lt.u32.totalorder %s5396_s5, %s5827_s10 }
  0xb8   : > { %p5399_p13 = pnand %p5398_p8, %p5397_p12  ;;  %p5404_p2 = por %p5403_p3, %p5402_p1 }
  0xba   : > { %p5400_p0 = pneg %p5399_p13  ;;  %p5406_p9 = por %p5405_p5, %p5404_p2 }
  0xbc   : > { %p5407_p4 = pnand %p5406_p9, %p5400_p0 }
  0xbe   : > { %5410 = shalt.err (!%p5407_p4)
}
  0xbf   : > { %s5411_s26 = scalar_lea.vmem %s5833_s18, 512  ;;  %s5547_s16 = smov [#allocation2]  }
  0xc0   : > { %p5412_p12 = scmp.ne.s32.totalorder %s5833_s18, %s5411_s26  ;;  %s5416_s14 = sshll.u32 %s5547_s16, 4  ;;  %s5417_s14 = int_to_ptr.vmem [resolvable:$false] %s5416_s14 }
  0xc1   : > { %s5418_s17 = scalar_lea.vmem %s5417_s14, 1024  ;;  %p5419_p6 = scmp.lt.s32.totalorder %s5833_s18, %s5417_s14 }
  0xc2   : > { %p5414_p13 = pnand %p5412_p12, %p5398_p8  ;;  %p5420_p1 = scmp.lt.s32.totalorder %s5418_s17, %s5411_s26 }
  0xc4   : > { %p5415_p10 = pneg %p5414_p13  ;;  %p5421_p3 = por %p5420_p1, %p5419_p6 }
  0xc6   : > { %p5422_p2 = pnand %p5421_p3, %p5415_p10 }
  0xc8   : > { %5425 = shalt.err (!%p5422_p2)
}
  0xc9   : > { %s5548_s5 = smov 128   ;;  %s5549_s30 = smov 8  }
  0xca   : > { %s7081_s15 = scalar_lea.sflag [#allocation3], %s5816_s20  ;;  %s434_s16 = sand.u32 1, %s5538_s24  }
  0xcb   : > { %5047 = dma.hbm_to_vmem [thread:$0]  (!%p5829_p11), %s5827_s10, 512, %s5833_s18, %s7081_s15, %s5548_s5, %s5548_s5, %s5549_s30  }
  0xcc   : > { %s4673_s0 = sshll.u32 %s5816_s20, 1  ;;  %s4782_s14 = sshll.u32 %s5538_s24, 5 }
  0xcd   : > { %s438_s26 = scalar_lea.vmem [#allocation5], %s4673_s0  ;;  %s5869_s7 = scalar_lea.hbm %s7040_s1, %s4782_s14 }
  0xce   : > { %s445_s17 = sshll.u32 %s438_s26, 4  ;;  %s5873_s8 = scalar_lea.sflag [#allocation6], %s434_s16  ;;  %s5871_s17 = int_to_ptr.vmem [resolvable:$true] %s445_s17 }
  0xcf   : > { %s5426_s9 = scalar_lea.hbm %s5869_s7, 32  ;;  %s5431_s2 = scalar_lea.hbm %s7040_s1, 64 }
  0xd0   : > { %p5427_p6 = scmp.ne.s32.totalorder %s5869_s7, %s5426_s9  ;;  %p5432_p5 = scmp.lt.u32.totalorder %s5869_s7, %s7040_s1 }
  0xd1   : > { %p5433_p9 = scmp.lt.u32.totalorder %s5431_s2, %s5426_s9  ;;  %p5435_p12 = scmp.lt.u32.totalorder %s5426_s9, %s5869_s7 }
  0xd2   : > { %p5429_p10 = pnand %p5427_p6, %p5398_p8 }
  0xd3   : > { %p5434_p4 = por %p5433_p9, %p5432_p5 }
  0xd4   : > { %p5430_p0 = pneg %p5429_p10 }
  0xd5   : > { %p5436_p13 = por %p5435_p12, %p5434_p4 }
  0xd7   : > { %p5437_p1 = pnand %p5436_p13, %p5430_p0 }
  0xd9   : > { %5440 = shalt.err (!%p5437_p1)
}
  0xda   : > { %s5441_s18 = scalar_lea.vmem %s5871_s17, 32  ;;  %s5550_s5 = smov [#allocation5]  }
  0xdb   : > { %p5442_p3 = scmp.ne.s32.totalorder %s5871_s17, %s5441_s18  ;;  %s5446_s30 = sshll.u32 %s5550_s5, 4  ;;  %s5447_s30 = int_to_ptr.vmem [resolvable:$false] %s5446_s30 }
  0xdc   : > { %s5448_s15 = scalar_lea.vmem %s5447_s30, 64  ;;  %p5449_p10 = scmp.lt.s32.totalorder %s5871_s17, %s5447_s30 }
  0xdd   : > { %p5444_p2 = pnand %p5442_p3, %p5398_p8  ;;  %p5450_p5 = scmp.lt.s32.totalorder %s5448_s15, %s5441_s18 }
  0xdf   : > { %p5445_p6 = pneg %p5444_p2  ;;  %p5451_p9 = por %p5450_p5, %p5449_p10 }
  0xe1   : > { %p5452_p4 = pnand %p5451_p9, %p5445_p6 }
  0xe3   : > { %5455 = shalt.err (!%p5452_p4)
}
  0xe4   : > { %s5551_s9 = smov 16   ;;  %s5552_s16 = smov 1  }
  0xe5   : > { %5050 = dma.hbm_to_vmem [thread:$0]  (!%p5829_p11), %s5869_s7, 32, %s5871_s17, %s5873_s8, %s5551_s9, %s5551_s9, %s5552_s16  }
  0xe6   : > { %p7082_p8 = scmp.ne.s32.totalorder %s7067_s28, 0 }
  0xe7   : > { %s5902_s14 = sand.u32 (!%p7082_p8), 1, %s5530_s22  }
  0xe8   : > { %457 = sbr.rel (%p7082_p8) target bundleno = 2579 (0xa13), region = 68  ;;  %s4677_s26 = sshll.u32 (!%p7082_p8), %s5902_s14, 5 }
  0xe9   : > { %s460_s0 = scalar_lea.sflag (!%p7082_p8), [#allocation3], %s5902_s14  ;;  %s5908_s20 = scalar_lea.vmem (!%p7082_p8), [#allocation2], %s4677_s26 }
  0xef   : > { %5501 = dma.done.wait (%p5806_p7), %s460_s0, 512  }
  0xf0   : > { %5503 = vsyncadd (%p5806_p7), %s460_s0, 4294966784  ;;  %s468_s7 = sand.u32 1, %s5652_s27   ;;  %s4678_s8 = sshll.u32 %s5902_s14, 1 }
  0xf1   : > { %s469_s28 = scalar_lea.sflag [#allocation6], %s468_s7  ;;  %s5916_s25 = scalar_lea.vmem [#allocation5], %s4678_s8 }
  0xf2   : > { %5505 = dma.done.wait (%p5806_p7), %s469_s28, 32  }
  0xf3   : > { %5507 = vsyncadd (%p5806_p7), %s469_s28, 4294967264  ;;  %p7083_p11 = scmp.eq.s32.totalorder %s5652_s27, 0 }
  0xf5   : > { %5509 = dma.done.wait (%p7083_p11), [#allocation6], 1536   ;;  %p7084_p0 = pmov %p7083_p11 }
  0xf7   : > { %5511 = vsyncadd (%p7084_p0), [#allocation6], 4294965760  ;;  %p7085_p12 = pmov %p7084_p0 }
  0xf8   : > { %p7086_p13 = pmov %p7084_p0 }
  0xf9   : > { %5513 = dma.done.wait (%p7085_p12), [#allocation9], 528  }
  0xfa   : > { %5515 = vsyncadd (%p7086_p13), [#allocation9], 4294966768  ;;  %p7087_p1 = pmov %p7084_p0 }
  0xfb   : > { %p7088_p3 = pmov %p7084_p0 }
  0xfc   : > { %5517 = dma.done.wait (%p7087_p1), [#allocation12], 32  }
  0xfd   : > { %5519 = vsyncadd (%p7088_p3), [#allocation12], 4294967264  ;;  %vm550_vm0 = vcmask 523264   ;;  %v542_v0 = vld [vmem:[%s5908_s20] sm:$0xff]  ;;  %v544_v1 = vld [vmem:[%s5908_s20 + $0x10] sm:$0xff]  ;;  %s5553_s10 = smov 96  }
  0xfe   : > { %v543_v2 = vld [vmem:[%s5908_s20 + $0x8] sm:$0xff]  ;;  %v551_v3 = vsel %vm550_vm0, %v542_v0, 0.0  ;;  %v557_v4 = vsel %vm550_vm0, %v544_v1, 0.0  ;;  %v545_v5 = vld [vmem:[%s5908_s20 + $0x18] sm:$0xff]  ;;  %v4685_v51 = vld [vmem:[%s7045_s6] ss:$0 sm:$0xff] }
  0xff   : > { %552 = vadd.xlane.f32.xlu0 %v551_v3  ;;  %558 = vadd.xlane.f32.xlu1 %v557_v4  ;;  %v554_v6 = vsel %vm550_vm0, %v543_v2, 0.0  ;;  %v560_v7 = vsel %vm550_vm0, %v545_v5, 0.0  ;;  %v5152_v28 = vld [vmem:[#allocation7] sm:$0xff]   ;;  %v5154_v30 = vld [vmem:[#allocation7 + $0x8] sm:$0xff]   ;;  %v5156_v32 = vld [vmem:[#allocation7 + $0x10] sm:$0xff]   ;;  %s5554_s18 = smov 112  }
 0x100   : > { %v5153_v29 = vld [vmem:[#allocation7 + $0x20] sm:$0xff]   ;;  %4846 = vmatprep.subr.bf16.mxu0 %v5152_v28  ;;  %v5155_v31 = vld [vmem:[#allocation7 + $0x28] sm:$0xff]   ;;  %v5157_v33 = vld [vmem:[#allocation7 + $0x30] sm:$0xff]   ;;  %s5555_s15 = smov 80   ;;  %vm5557_vm1 = vmmov 0   ;;  %vm2676_vm2 = vcmask 130048  }
 0x101   : > { %4847 = vmatpush3.bf16.msra.mxu0 %v5152_v28  ;;  %4858 = vmatprep.subr.bf16.mxu1 %v5153_v29  ;;  %v5158_v34 = vld [vmem:[#allocation7 + $0x18] sm:$0xff]   ;;  %v5160_v36 = vld [vmem:[#allocation7 + $0x40] sm:$0xff]   ;;  %v5556_v28 = vmov 0.0   ;;  %s5560_s0 = smov 32   ;;  %s5561_s7 = smov 16   ;;  %vm4213_vm3 = vcmask 261120  }
 0x102   : > { %4859 = vmatpush3.bf16.msra.mxu1 %v5153_v29  ;;  %4848 = vmatprep.subr.bf16.mxu0 %v5154_v30  ;;  %v5159_v35 = vld [vmem:[#allocation7 + $0x38] sm:$0xff]   ;;  %v4686_v57 = vld [vmem:[#allocation10] ss:$0 sm:$0xff]  ;;  %s5562_s8 = smov 48   ;;  %vm4218_vm4 = vcmask 392192   ;;  %s7089_s19 = sld [smem:[#allocation24_spill]] }
 0x103   : > { %555 = vadd.xlane.f32.xlu0 %v554_v6  ;;  %561 = vadd.xlane.f32.xlu1 %v560_v7  ;;  %v5162_v6 = vld [vmem:[#allocation7 + $0x50] sm:$0xff]   ;;  %v5163_v7 = vld [vmem:[#allocation7 + $0x58] sm:$0xff]   ;;  %s7090_s2 = sld [smem:[#allocation28_spill]]  ;;  %s4783_s28 = sshll.u32 %s5652_s27, 9 }
 0x104   : > { %4860 = vmatprep.subr.bf16.mxu1 %v5155_v31  ;;  %p7093_p2 = scmp.ne.s32.totalorder %s7077_s12, 0  ;;  %s5563_s4 = smov [#allocation14]  }
 0x105   : > { %4849 = vmatpush3.bf16.msra.mxu0 %v5154_v30 }
 0x106   : > { %4861 = vmatpush3.bf16.msra.mxu1 %v5155_v31  ;;  %4850 = vmatprep.subr.bf16.mxu0 %v5156_v32  ;;  %v4703_v31 = vld [vmem:[%s7042_s3 + $0x2] ss:$0 sm:$0xff] }
 0x107   : > { %4862 = vmatprep.subr.bf16.mxu1 %v5157_v33 }
 0x109   : > { %4851 = vmatpush3.bf16.msra.mxu0 %v5156_v32 }
 0x10a   : > { %4863 = vmatpush3.bf16.msra.mxu1 %v5157_v33  ;;  %4852 = vmatprep.subr.bf16.mxu0 %v5158_v34 }
 0x10b   : > { %4864 = vmatprep.subr.bf16.mxu1 %v5159_v35 }
 0x10d   : > { %4853 = vmatpush3.bf16.msra.mxu0 %v5158_v34 }
 0x10e   : > { %4865 = vmatpush3.bf16.msra.mxu1 %v5159_v35  ;;  %4870 = vmatprep.subr.bf16.mxu0 %v5160_v36 }
 0x10f   : > { %4882 = vmatprep.subr.bf16.mxu1 %v5556_v28 }
 0x18c   : > { %v553_v8 = vpop.xlane.xlu0 %552  ;;  %v559_v9 = vpop.xlane.xlu1 %558 }
 0x18d   : > { %v564_v10 = vmul.f32 0.015625, %v553_v8  ;;  %v566_v11 = vmul.f32 0.015625, %v559_v9  ;;  %v4695_v8 = vld [vmem:[%s7042_s3 + $0x1] ss:$0 sm:$0xff] }
 0x18f   : > { %v5942_v12 = vsub.f32 %v542_v0, %v564_v10  ;;  %v5944_v13 = vsub.f32 %v544_v1, %v566_v11 }
 0x190   : > { %v556_v14 = vpop.xlane.xlu0 %555  ;;  %v562_v15 = vpop.xlane.xlu1 %561 }
 0x191   : > { %v565_v16 = vmul.f32 0.015625, %v556_v14  ;;  %v567_v17 = vmul.f32 0.015625, %v562_v15  ;;  %v572_v18 = vmul.f32 %v5942_v12, %v5942_v12  ;;  %v574_v19 = vmul.f32 %v5944_v13, %v5944_v13 }
 0x193   : > { %v569_v20 = vsub.f32 %v543_v2, %v565_v16  ;;  %v5950_v21 = vsub.f32 %v545_v5, %v567_v17  ;;  %v576_v22 = vsel %vm550_vm0, %v572_v18, 0.0  ;;  %v582_v23 = vsel %vm550_vm0, %v574_v19, 0.0  ;;  %v5161_v5 = vld [vmem:[#allocation7 + $0x48] sm:$0xff]   ;;  %v4687_v19 = vld [vmem:[%s7042_s3] ss:$0 sm:$0xff] }
 0x194   : > { %577 = vadd.xlane.f32.xlu0 %v576_v22 }
 0x195   : > { %v573_v24 = vmul.f32 %v569_v20, %v569_v20  ;;  %v575_v25 = vmul.f32 %v5950_v21, %v5950_v21 }
 0x197   : > { %v579_v26 = vsel %vm550_vm0, %v573_v24, 0.0  ;;  %v585_v27 = vsel %vm550_vm0, %v575_v25, 0.0 }
 0x198   : > { %583 = vadd.xlane.f32.xlu0 %v582_v23  ;;  %580 = vadd.xlane.f32.xlu1 %v579_v26 }
 0x19c   : > { %586 = vadd.xlane.f32.xlu1 %v585_v27 }
 0x221   : > { %v578_v37 = vpop.xlane.xlu0 %577 }
 0x222   : > { %v588_v38 = vmul.f32 0.015625, %v578_v37 }
 0x224   : > { %v592_v39 = vadd.f32 1e-05, %v588_v38  ;;  %v945_v38 = vlaneseq }
 0x225   : > { %v581_v40 = vpop.xlane.xlu1 %580  ;;  %v584_v41 = vpop.xlane.xlu0 %583 }
 0x226   : > { %5172 = vrsqrt.f32 %v592_v39  ;;  %v589_v42 = vmul.f32 0.015625, %v581_v40  ;;  %v590_v43 = vmul.f32 0.015625, %v584_v41  ;;  %v5559_v39 = vmov 1934713408  }
 0x227   : > { %v975_v40 = vunpack.c.l.s4 %v5559_v39 }
 0x228   : > { %v593_v44 = vadd.f32 1e-05, %v589_v42  ;;  %v594_v45 = vadd.f32 1e-05, %v590_v43  ;;  %v946_v42 = vshrl.u32 %v945_v38, 7 }
 0x229   : > { %v587_v46 = vpop.xlane.xlu1 %586 }
 0x22a   : > { %5174 = vrsqrt.f32 %v593_v44  ;;  %v591_v47 = vmul.f32 0.015625, %v587_v46 }
 0x22b   : > { %5176 = vrsqrt.f32 %v594_v45  ;;  %v976_v45 = vunpack.c.0.s8 %v975_v40 }
 0x22c   : > { %v595_v48 = vadd.f32 1e-05, %v591_v47 }
 0x22e   : > { %5178 = vrsqrt.f32 %v595_v48 }
 0x230   : > { %v5173_v49 = vpop.eup %5172 }
 0x231   : > { %v600_v50 = vmul.f32 %v5173_v49, %v5942_v12 }
 0x233   : > { %v610_v55 = vmul.f32 %v4685_v51, %v600_v50 }
 0x234   : > { %v5175_v52 = vpop.eup %5174 }
 0x235   : > { %v5177_v53 = vpop.eup %5176  ;;  %v601_v54 = vmul.f32 %v5175_v52, %v569_v20  ;;  %v620_v61 = vadd.f32 %v4686_v57, %v610_v55 }
 0x236   : > { %v602_v56 = vmul.f32 %v5177_v53, %v5944_v13  ;;  %v6083_v53 = vsub.s32 %v976_v45, %v946_v42 }
 0x237   : > { %v611_v58 = vmul.f32 %v4685_v51, %v601_v54 }
 0x238   : > { %v5179_v59 = vpop.eup %5178  ;;  %v612_v63 = vmul.f32 %v4685_v51, %v602_v56 }
 0x239   : > { %v603_v60 = vmul.f32 %v5179_v59, %v5950_v21  ;;  %v621_v62 = vadd.f32 %v4686_v57, %v611_v58 }
 0x23a   : > { %v622_v2 = vadd.f32 %v4686_v57, %v612_v63 }
 0x23b   : > { %v624_v0 = vpack.c.bf16 %v621_v62, %v620_v61  ;;  %v613_v1 = vmul.f32 %v4685_v51, %v603_v60 }
 0x23d   : > { %4854 = vmatprep.mubr.msk.bf16.mxu0 %vm550_vm0, %v624_v0  ;;  %4866 = vmatprep.mubr.msk.bf16.mxu1 %vm550_vm0, %v624_v0  ;;  %v623_v3 = vadd.f32 %v4686_v57, %v613_v1 }
 0x23f   : > { %v625_v4 = vpack.c.bf16 %v623_v3, %v622_v2 }
 0x241   : > { %4855 = vmatmul.mubr.msk.bf16.vlgmr.msra.gmra.mrb[0].mxu0 %vm550_vm0, %v625_v4  ;;  %4867 = vmatmul.mubr.msk.bf16.vlgmr.msra.gmra.mrb[0].mxu1 %vm550_vm0, %v625_v4 }
 0x242   : > { %4871 = vmatpush3.bf16.msra.mxu0 %v5160_v36  ;;  %4878 = vmatprep.mubr.msk.bf16.mxu0 %vm550_vm0, %v624_v0  ;;  %v5558_v36 = vmov 1983009808  }
 0x243   : > { %4872 = vmatprep.subr.bf16.mxu0 %v5161_v5  ;;  %4884 = vmatprep.mubr.msk.bf16.mxu1 %vm5557_vm1, %v5556_v28  ;;  %v943_v37 = vunpack.c.l.s4 %v5558_v36 }
 0x245   : > { %v944_v41 = vunpack.c.0.s8 %v943_v37 }
 0x246   : > { %4873 = vmatpush3.bf16.msra.mxu0 %v5161_v5 }
 0x247   : > { %4874 = vmatprep.subr.bf16.mxu0 %v5162_v6  ;;  %v6079_v46 = vsub.s32 %v944_v41, %v946_v42 }
 0x24a   : > { %4875 = vmatpush3.bf16.msra.mxu0 %v5162_v6 }
 0x24b   : > { %4876 = vmatprep.subr.bf16.mxu0 %v5163_v7 }
 0x24e   : > { %4877 = vmatpush3.bf16.msra.mxu0 %v5163_v7 }
 0x24f   : > { %4894 = vmatprep.subr.bf16.mxu0 %v5556_v28 }
 0x251   : > { %4879 = vmatmul.mubr.msk.bf16.vlgmr.msra.gmra.mrb[4].mxu0 %vm550_vm0, %v625_v4 }
 0x252   : > { %4896 = vmatprep.mubr.msk.bf16.mxu0 %vm5557_vm1, %v5556_v28 }
 0x314   : > { %v4856_v9 = vpop.f32.mrb[0].mxu0  ;;  %v4868_v10 = vpop.f32.mrb[0].mxu1 }
 0x315   : > { %v705_v11 = vpop.f32.mrb[1].mxu0  ;;  %v795_v12 = vpop.f32.mrb[1].mxu1  ;;  %v6004_v26 = vadd.f32 %v4868_v10, %v4695_v8  ;;  %v6022_v29 = vadd.f32 %v4856_v9, %v4687_v19 }
 0x316   : > { %v5973_v13 = vadd.f32 %v4695_v8, %v795_v12  ;;  %v4857_v14 = vpop.f32.mrb[2].mxu0  ;;  %v4869_v15 = vpop.f32.mrb[2].mxu1  ;;  %v5988_v20 = vadd.f32 %v4687_v19, %v705_v11 }
 0x317   : > { %v708_v16 = vpop.f32.mrb[3].mxu0  ;;  %v798_v17 = vpop.f32.mrb[3].mxu1  ;;  %v6014_v27 = vadd.f32 %v4869_v15, %v4695_v8  ;;  %v6032_v30 = vadd.f32 %v4857_v14, %v4687_v19 }
 0x318   : > { %1508 = vrot.lane.b32.xlu1 %v5973_v13, %s5553_s10  ;;  %1496 = vrot.lane.b32.xlu0 %v5973_v13, %s5554_s18  ;;  %v5979_v18 = vadd.f32 %v4695_v8, %v798_v17  ;;  %v5998_v23 = vadd.f32 %v4687_v19, %v708_v16 }
 0x31c   : > { %1498 = vrot.lane.b32.xlu1 %v5979_v18, %s5554_s18  ;;  %1520 = vrot.lane.b32.xlu0 %v5973_v13, %s5555_s15 }
 0x320   : > { %1510 = vrot.lane.b32.xlu1 %v5979_v18, %s5553_s10  ;;  %904 = vrot.lane.b32.xlu0 %v5988_v20, %s5554_s18 }
 0x324   : > { %v4880_v21 = vpop.f32.mrb[4].mxu0  ;;  %1522 = vrot.lane.b32.xlu1 %v5979_v18, %s5555_s15  ;;  %916 = vrot.lane.b32.xlu0 %v5988_v20, %s5553_s10 }
 0x325   : > { %v885_v22 = vpop.f32.mrb[5].mxu0  ;;  %v6041_v32 = vadd.f32 %v4880_v21, %v4703_v31 }
 0x326   : > { %v4881_v24 = vpop.f32.mrb[6].mxu0  ;;  %v6051_v33 = vadd.f32 %v4703_v31, %v885_v22 }
 0x327   : > { %v888_v25 = vpop.f32.mrb[7].mxu0  ;;  %v6065_v34 = vadd.f32 %v4881_v24, %v4703_v31 }
 0x328   : > { %906 = vrot.lane.b32.xlu1 %v5998_v23, %s5554_s18  ;;  %928 = vrot.lane.b32.xlu0 %v5988_v20, %s5555_s15  ;;  %v6071_v35 = vadd.f32 %v4703_v31, %v888_v25 }
 0x32c   : > { %918 = vrot.lane.b32.xlu1 %v5998_v23, %s5553_s10  ;;  %1500 = vrot.lane.b32.xlu0 %v6004_v26, %s5554_s18 }
 0x330   : > { %930 = vrot.lane.b32.xlu1 %v5998_v23, %s5555_s15  ;;  %1512 = vrot.lane.b32.xlu0 %v6004_v26, %s5553_s10 }
 0x334   : > { %1502 = vrot.lane.b32.xlu1 %v6014_v27, %s5554_s18  ;;  %1524 = vrot.lane.b32.xlu0 %v6004_v26, %s5555_s15 }
 0x338   : > { %1514 = vrot.lane.b32.xlu1 %v6014_v27, %s5553_s10  ;;  %908 = vrot.lane.b32.xlu0 %v6022_v29, %s5554_s18 }
 0x33c   : > { %1526 = vrot.lane.b32.xlu1 %v6014_v27, %s5555_s15  ;;  %920 = vrot.lane.b32.xlu0 %v6022_v29, %s5553_s10 }
 0x340   : > { %910 = vrot.lane.b32.xlu1 %v6032_v30, %s5554_s18  ;;  %932 = vrot.lane.b32.xlu0 %v6022_v29, %s5555_s15 }
 0x344   : > { %922 = vrot.lane.b32.xlu1 %v6032_v30, %s5553_s10  ;;  %2092 = vrot.lane.b32.xlu0 %v6041_v32, %s5554_s18 }
 0x348   : > { %934 = vrot.lane.b32.xlu1 %v6032_v30, %s5555_s15  ;;  %2116 = vrot.lane.b32.xlu0 %v6041_v32, %s5555_s15 }
 0x34c   : > { %2104 = vrot.lane.b32.xlu1 %v6041_v32, %s5553_s10  ;;  %2088 = vrot.lane.b32.xlu0 %v6051_v33, %s5554_s18 }
 0x350   : > { %2100 = vrot.lane.b32.xlu1 %v6051_v33, %s5553_s10  ;;  %2112 = vrot.lane.b32.xlu0 %v6051_v33, %s5555_s15 }
 0x354   : > { %2094 = vrot.lane.b32.xlu1 %v6065_v34, %s5554_s18 }
 0x358   : > { %2106 = vrot.lane.b32.xlu1 %v6065_v34, %s5553_s10 }
 0x35c   : > { %2090 = vrot.lane.b32.xlu1 %v6071_v35, %s5554_s18 }
 0x360   : > { %2102 = vrot.lane.b32.xlu1 %v6071_v35, %s5553_s10  ;;  %s5460_s10 = sshll.u32 %s5563_s4, 4  ;;  %s5461_s10 = int_to_ptr.vmem [resolvable:$false] %s5460_s10 }
 0x361   : > { %s5462_s18 = scalar_lea.vmem %s5461_s10, 1024 }
 0x364   : > { %2114 = vrot.lane.b32.xlu1 %v6071_v35, %s5555_s15 }
 0x38a   : > { %v1509_v43 = vpop.permute.xlu1 %1508  ;;  %v1497_v44 = vpop.permute.xlu0 %1496 }
 0x38b   : > { %v1532_v47 = vcombine.low %v5973_v13, %v1509_v43  ;;  %v1533_v48 = vcombine.high %v5973_v13, %v1509_v43 }
 0x38d   : > { %v1540_v54 = vrot.slane %v1532_v47, %v6079_v46  ;;  %v1547_v55 = vrot.slane %v1533_v48, %v6079_v46 }
 0x38e   : > { %v1499_v49 = vpop.permute.xlu1 %1498  ;;  %v1521_v50 = vpop.permute.xlu0 %1520 }
 0x38f   : > { %v1548_v51 = vcombine.low %v1497_v44, %v1521_v50  ;;  %v1549_v52 = vcombine.high %v1497_v44, %v1521_v50 }
 0x391   : > { %v1556_v56 = vrot.slane %v1548_v51, %v6079_v46  ;;  %v1563_v57 = vrot.slane %v1549_v52, %v6079_v46 }
 0x392   : > { %v1511_v58 = vpop.permute.xlu1 %1510  ;;  %v905_v59 = vpop.permute.xlu0 %904 }
 0x393   : > { %v1564_v60 = vcombine.low %v1540_v54, %v1556_v56  ;;  %v1565_v61 = vcombine.high %v1540_v54, %v1556_v56  ;;  %v1580_v62 = vcombine.low %v1547_v55, %v1563_v57  ;;  %v1581_v63 = vcombine.high %v1547_v55, %v1563_v57 }
 0x394   : > { %v1600_v4 = vcombine.low %v5979_v18, %v1511_v58  ;;  %v1601_v5 = vcombine.high %v5979_v18, %v1511_v58 }
 0x395   : > { %v1572_v0 = vrot.slane %v1564_v60, %v6083_v53  ;;  %v1579_v1 = vrot.slane %v1565_v61, %v6083_v53  ;;  %v1588_v2 = vrot.slane %v1580_v62, %v6083_v53  ;;  %v1595_v3 = vrot.slane %v1581_v63, %v6083_v53 }
 0x396   : > { %v1523_v6 = vpop.permute.xlu1 %1522  ;;  %v917_v7 = vpop.permute.xlu0 %916  ;;  %v1608_v21 = vrot.slane %v1600_v4, %v6079_v46  ;;  %v1615_v22 = vrot.slane %v1601_v5, %v6079_v46 }
 0x397   : > { %v1804_v8 = vcombine.low %v1572_v0, %v1579_v1  ;;  %v4718_v9 = vcombine.high %v1572_v0, %v1579_v1  ;;  %v1820_v10 = vcombine.low %v1588_v2, %v1595_v3  ;;  %v4719_v11 = vcombine.high %v1588_v2, %v1595_v3 }
 0x398   : > { %v1616_v12 = vcombine.low %v1499_v49, %v1523_v6  ;;  %v1617_v13 = vcombine.high %v1499_v49, %v1523_v6  ;;  %v940_v14 = vcombine.low %v5988_v20, %v917_v7  ;;  %v941_v15 = vcombine.high %v5988_v20, %v917_v7 }
 0x399   : > { %v6098_v16 = vrot.slane %v1804_v8, %v6079_v46  ;;  %v6101_v17 = vrot.slane %v4718_v9, %v6079_v46  ;;  %v6104_v18 = vrot.slane %v1820_v10, %v6079_v46  ;;  %v6107_v19 = vrot.slane %v4719_v11, %v6079_v46 }
 0x39a   : > { %v1624_v24 = vrot.slane %v1616_v12, %v6079_v46  ;;  %v1631_v20 = vrot.slane %v1617_v13, %v6079_v46  ;;  %v907_v25 = vpop.permute.xlu1 %906  ;;  %v929_v31 = vpop.permute.xlu0 %928  ;;  %v948_v44 = vrot.slane %v940_v14, %v6079_v46  ;;  %v955_v45 = vrot.slane %v941_v15, %v6079_v46 }
 0x39b   : > { %v956_v36 = vcombine.low %v905_v59, %v929_v31  ;;  %v957_v37 = vcombine.high %v905_v59, %v929_v31  ;;  %v1836_v38 = vcombine.low %v6098_v16, %v6101_v17  ;;  %v1852_v39 = vcombine.low %v6104_v18, %v6107_v19 }
 0x39c   : > { %v1632_v40 = vcombine.low %v1608_v21, %v1624_v24  ;;  %v1633_v41 = vcombine.high %v1608_v21, %v1624_v24  ;;  %v1648_v42 = vcombine.low %v1615_v22, %v1631_v20  ;;  %v1649_v43 = vcombine.high %v1615_v22, %v1631_v20 }
 0x39d   : > { %v964_v47 = vrot.slane %v956_v36, %v6079_v46  ;;  %v971_v48 = vrot.slane %v957_v37, %v6079_v46  ;;  %v6128_v60 = vrot.slane %v1836_v38, %v6083_v53  ;;  %v6131_v61 = vrot.slane %v1852_v39, %v6083_v53 }
 0x39e   : > { %v1640_v49 = vrot.slane %v1632_v40, %v6083_v53  ;;  %v1647_v50 = vrot.slane %v1633_v41, %v6083_v53  ;;  %v1656_v51 = vrot.slane %v1648_v42, %v6083_v53  ;;  %v1663_v52 = vrot.slane %v1649_v43, %v6083_v53  ;;  %v919_v54 = vpop.permute.xlu1 %918  ;;  %v6125_v55 = vpop.permute.xlu0 %1500 }
 0x39f   : > { %v972_v56 = vcombine.low %v948_v44, %v964_v47  ;;  %v973_v57 = vcombine.high %v948_v44, %v964_v47  ;;  %v988_v58 = vcombine.low %v955_v45, %v971_v48  ;;  %v989_v59 = vcombine.high %v955_v45, %v971_v48 }
 0x3a0   : > { %v1872_v2 = vcombine.low %v1640_v49, %v1647_v50  ;;  %v4720_v3 = vcombine.high %v1640_v49, %v1647_v50  ;;  %v1888_v4 = vcombine.low %v1656_v51, %v1663_v52  ;;  %v4721_v5 = vcombine.high %v1656_v51, %v1663_v52 }
 0x3a1   : > { %v980_v62 = vrot.slane %v972_v56, %v6083_v53  ;;  %v987_v63 = vrot.slane %v973_v57, %v6083_v53  ;;  %v996_v0 = vrot.slane %v988_v58, %v6083_v53  ;;  %v1003_v1 = vrot.slane %v989_v59, %v6083_v53 }
 0x3a2   : > { %v931_v6 = vpop.permute.xlu1 %930  ;;  %v1513_v7 = vpop.permute.xlu0 %1512  ;;  %v1008_v12 = vcombine.low %v5998_v23, %v919_v54  ;;  %v1009_v13 = vcombine.high %v5998_v23, %v919_v54  ;;  %v6153_v40 = vrot.slane %v4720_v3, %v6079_v46  ;;  %v6156_v41 = vrot.slane %v1888_v4, %v6079_v46 }
 0x3a3   : > { %v1212_v8 = vcombine.low %v980_v62, %v987_v63  ;;  %v4710_v9 = vcombine.high %v980_v62, %v987_v63  ;;  %v1228_v10 = vcombine.low %v996_v0, %v1003_v1  ;;  %v4711_v11 = vcombine.high %v996_v0, %v1003_v1 }
 0x3a4   : > { %v1024_v14 = vcombine.low %v907_v25, %v931_v6  ;;  %v1025_v15 = vcombine.high %v907_v25, %v931_v6  ;;  %v1016_v31 = vrot.slane %v1008_v12, %v6079_v46  ;;  %v1023_v36 = vrot.slane %v1009_v13, %v6079_v46 }
 0x3a5   : > { %v1219_v21 = vrot.slane %v1212_v8, %v6079_v46  ;;  %v1227_v22 = vrot.slane %v4710_v9, %v6079_v46  ;;  %v1235_v24 = vrot.slane %v1228_v10, %v6079_v46  ;;  %v1243_v20 = vrot.slane %v4711_v11, %v6079_v46 }
 0x3a6   : > { %v1032_v37 = vrot.slane %v1024_v14, %v6079_v46  ;;  %v1039_v38 = vrot.slane %v1025_v15, %v6079_v46  ;;  %v6147_v39 = vpop.permute.xlu1 %1502  ;;  %v1525_v23 = vpop.permute.xlu0 %1524  ;;  %v6150_v25 = vrot.slane %v1872_v2, %v6079_v46  ;;  %v6159_v42 = vrot.slane %v4721_v5, %v6079_v46 }
 0x3a7   : > { %v1244_v48 = vcombine.low %v1219_v21, %v1227_v22  ;;  %v1245_v49 = vcombine.high %v1219_v21, %v1227_v22  ;;  %v1260_v50 = vcombine.low %v1235_v24, %v1243_v20  ;;  %v1261_v51 = vcombine.high %v1235_v24, %v1243_v20 }
 0x3a8   : > { %v1040_v43 = vcombine.low %v1016_v31, %v1032_v37  ;;  %v1041_v44 = vcombine.high %v1016_v31, %v1032_v37  ;;  %v1056_v45 = vcombine.low %v1023_v36, %v1039_v38  ;;  %v1057_v47 = vcombine.high %v1023_v36, %v1039_v38 }
 0x3a9   : > { %v1668_v59 = vcombine.low %v6004_v26, %v1513_v7  ;;  %v1669_v62 = vcombine.high %v6004_v26, %v1513_v7  ;;  %v1684_v63 = vcombine.low %v6125_v55, %v1525_v23  ;;  %v1685_v0 = vcombine.high %v6125_v55, %v1525_v23 }
 0x3aa   : > { %v1048_v52 = vrot.slane %v1040_v43, %v6083_v53  ;;  %v1055_v54 = vrot.slane %v1041_v44, %v6083_v53  ;;  %v1064_v56 = vrot.slane %v1056_v45, %v6083_v53  ;;  %v1071_v57 = vrot.slane %v1057_v47, %v6083_v53  ;;  %v6165_v58 = vpop.permute.xlu1 %1514  ;;  %v6171_v5 = vpop.permute.xlu0 %908 }
 0x3ab   : > { %v1676_v6 = vrot.slane %v1668_v59, %v6079_v46  ;;  %v1683_v8 = vrot.slane %v1669_v62, %v6079_v46  ;;  %v1692_v9 = vrot.slane %v1684_v63, %v6079_v46  ;;  %v1699_v10 = vrot.slane %v1685_v0, %v6079_v46 }
 0x3ac   : > { %v1280_v1 = vcombine.low %v1048_v52, %v1055_v54  ;;  %v4712_v2 = vcombine.high %v1048_v52, %v1055_v54  ;;  %v1296_v3 = vcombine.low %v1064_v56, %v1071_v57  ;;  %v4713_v4 = vcombine.high %v1064_v56, %v1071_v57 }
 0x3ad   : > { %v1700_v13 = vcombine.low %v1676_v6, %v1692_v9  ;;  %v1701_v14 = vcombine.high %v1676_v6, %v1692_v9  ;;  %v1716_v15 = vcombine.low %v1683_v8, %v1699_v10  ;;  %v1717_v21 = vcombine.high %v1683_v8, %v1699_v10 }
 0x3ae   : > { %v1287_v26 = vrot.slane %v1280_v1, %v6079_v46  ;;  %v1295_v7 = vrot.slane %v4712_v2, %v6079_v46  ;;  %v1303_v55 = vrot.slane %v1296_v3, %v6079_v46  ;;  %v1311_v11 = vrot.slane %v4713_v4, %v6079_v46  ;;  %v1527_v12 = vpop.permute.xlu1 %1526  ;;  %v6205_v52 = vpop.permute.xlu0 %920 }
 0x3af   : > { %v6182_v36 = vrot.slane %v1700_v13, %v6083_v53  ;;  %v6185_v37 = vrot.slane %v1701_v14, %v6083_v53  ;;  %v6188_v38 = vrot.slane %v1716_v15, %v6083_v53  ;;  %v6191_v23 = vrot.slane %v1717_v21, %v6083_v53 }
 0x3b0   : > { %v1312_v22 = vcombine.low %v1287_v26, %v1295_v7  ;;  %v1313_v24 = vcombine.high %v1287_v26, %v1295_v7  ;;  %v1328_v20 = vcombine.low %v1303_v55, %v1311_v11  ;;  %v1329_v31 = vcombine.high %v1303_v55, %v1311_v11 }
 0x3b1   : > { %v6194_v43 = vrot.slane %v1244_v48, %v6083_v53  ;;  %v6197_v44 = vrot.slane %v1245_v49, %v6083_v53  ;;  %v6200_v45 = vrot.slane %v1260_v50, %v6083_v53  ;;  %v6203_v47 = vrot.slane %v1261_v51, %v6083_v53 }
 0x3b2   : > { %v6207_v54 = vpop.permute.xlu1 %910  ;;  %v6210_v56 = vrot.slane %v1312_v22, %v6083_v53  ;;  %v6213_v57 = vrot.slane %v1313_v24, %v6083_v53  ;;  %v6216_v48 = vrot.slane %v1328_v20, %v6083_v53  ;;  %v1940_v49 = vcombine.low %v6182_v36, %v6185_v37 }
 0x3b3   : > { %v6221_v50 = vrot.slane %v1329_v31, %v6083_v53  ;;  %v4722_v51 = vcombine.high %v6182_v36, %v6185_v37  ;;  %v1736_v59 = vcombine.low %v6014_v27, %v6165_v58  ;;  %v1904_v62 = vcombine.low %v6150_v25, %v6153_v40 }
 0x3b4   : > { %v1956_v63 = vcombine.low %v6188_v38, %v6191_v23  ;;  %v4723_v0 = vcombine.high %v6188_v38, %v6191_v23  ;;  %v1737_v1 = vcombine.high %v6014_v27, %v6165_v58  ;;  %v1868_v2 = vcombine.low %v6128_v60, %v6131_v61 }
 0x3b5   : > { %v6238_v3 = vrot.slane %v1940_v49, %v6079_v46  ;;  %v1744_v4 = vrot.slane %v1736_v59, %v6079_v46  ;;  %v6242_v6 = vrot.slane %v1904_v62, %v6083_v53  ;;  %v1920_v8 = vcombine.low %v6156_v41, %v6159_v42 }
 0x3b6   : > { %v1837_v9 = vcombine.high %v6098_v16, %v6101_v17  ;;  %v1853_v27 = vcombine.high %v6104_v18, %v6107_v19  ;;  %v1905_v58 = vcombine.high %v6150_v25, %v6153_v40  ;;  %v1921_v10 = vcombine.high %v6156_v41, %v6159_v42  ;;  %v6254_v26 = vpop.permute.xlu1 %922  ;;  %v933_v17 = vpop.permute.xlu0 %932 }
 0x3b7   : > { %v6257_v7 = vrot.slane %v1920_v8, %v6083_v53  ;;  %v1752_v55 = vcombine.low %v6147_v39, %v1527_v12  ;;  %v1753_v11 = vcombine.high %v6147_v39, %v1527_v12  ;;  %v1076_v16 = vcombine.low %v6022_v29, %v6205_v52 }
 0x3b8   : > { %v6264_v18 = vrot.slane %v1837_v9, %v6083_v53  ;;  %v6267_v19 = vrot.slane %v1853_v27, %v6083_v53  ;;  %v6270_v25 = vrot.slane %v1905_v58, %v6083_v53  ;;  %v6273_v40 = vrot.slane %v1921_v10, %v6083_v53 }
 0x3b9   : > { %v1751_v41 = vrot.slane %v1737_v1, %v6079_v46  ;;  %v1936_v39 = vcombine.low %v6242_v6, %v6257_v7  ;;  %v1760_v42 = vrot.slane %v1752_v55, %v6079_v46  ;;  %v1767_v12 = vrot.slane %v1753_v11, %v6079_v46 }
 0x3ba   : > { %v1870_v13 = vcombine.low %v6264_v18, %v6267_v19  ;;  %v1938_v14 = vcombine.low %v6270_v25, %v6273_v40  ;;  %v1077_v15 = vcombine.high %v6022_v29, %v6205_v52  ;;  %v1092_v21 = vcombine.low %v6171_v5, %v933_v17  ;;  %v6289_v49 = vpop.permute.xlu1 %934 }
 0x3bb   : > { %v2076_v22 = vpack.c.bf16 %v1936_v39, %v1868_v2  ;;  %v1768_v24 = vcombine.low %v1744_v4, %v1760_v42  ;;  %v1769_v20 = vcombine.high %v1744_v4, %v1760_v42  ;;  %v1784_v31 = vcombine.low %v1751_v41, %v1767_v12 }
 0x3bc   : > { %v2078_v36 = vpack.c.bf16 %v1938_v14, %v1870_v13  ;;  %v1785_v37 = vcombine.high %v1751_v41, %v1767_v12  ;;  %v1084_v38 = vrot.slane %v1076_v16, %v6079_v46  ;;  %v1093_v23 = vcombine.high %v6171_v5, %v933_v17 }
 0x3bd   : > { %v2681_v59 = vsel %vm2676_vm2, %v2076_v22, 0  ;;  %v1776_v62 = vrot.slane %v1768_v24, %v6083_v53  ;;  %v1783_v29 = vrot.slane %v1769_v20, %v6083_v53  ;;  %v1792_v52 = vrot.slane %v1784_v31, %v6083_v53  ;;  %v2093_v22 = vpop.permute.xlu0 %2092 }
 0x3be   : > { %4883 = vmatpush3.bf16.xpose.msra.mxu1 %v2681_v59  ;;  %v2775_v1 = vsel %vm2676_vm2, %v2078_v36, 0  ;;  %v1799_v2 = vrot.slane %v1785_v37, %v6083_v53  ;;  %v1100_v4 = vrot.slane %v1092_v21, %v6079_v46  ;;  %v1107_v8 = vrot.slane %v1093_v23, %v6079_v46 }
 0x3bf   : > { %4895 = vmatpush3.bf16.xpose.msra.mxu0 %v2775_v1  ;;  %v2008_v5 = vcombine.low %v1776_v62, %v1783_v29  ;;  %v4724_v9 = vcombine.high %v1776_v62, %v1783_v29  ;;  %v1091_v27 = vrot.slane %v1077_v15, %v6079_v46  ;;  %4888 = vmatprep.subr.bf16.mxu1 %v5556_v28 }
 0x3c0   : > { %v6302_v58 = vrot.slane %v4722_v51, %v6079_v46  ;;  %v6305_v10 = vrot.slane %v1956_v63, %v6079_v46  ;;  %v1108_v55 = vcombine.low %v1084_v38, %v1100_v4  ;;  %v1109_v11 = vcombine.high %v1084_v38, %v1100_v4  ;;  %4906 = vmatprep.subr.bf16.mxu0 %v5556_v28  ;;  %v2105_v63 = vpop.permute.xlu1 %2104 }
 0x3c1   : > { %v6309_v16 = vrot.slane %v4723_v0, %v6079_v46  ;;  %v1124_v17 = vcombine.low %v1091_v27, %v1107_v8  ;;  %v1125_v41 = vcombine.high %v1091_v27, %v1107_v8  ;;  %v1144_v39 = vcombine.low %v6032_v30, %v6254_v26 }
 0x3c2   : > { %v2024_v42 = vcombine.low %v1792_v52, %v1799_v2  ;;  %v4725_v12 = vcombine.high %v1792_v52, %v1799_v2  ;;  %v1116_v51 = vrot.slane %v1108_v55, %v6083_v53  ;;  %v1123_v13 = vrot.slane %v1109_v11, %v6083_v53  ;;  %v2117_v11 = vpop.permute.xlu0 %2116 }
 0x3c3   : > { %v6316_v14 = vrot.slane %v2008_v5, %v6079_v46  ;;  %v6319_v15 = vrot.slane %v4724_v9, %v6079_v46  ;;  %v1132_v0 = vrot.slane %v1124_v17, %v6083_v53  ;;  %v1139_v21 = vrot.slane %v1125_v41, %v6083_v53 }
 0x3c4   : > { %v1348_v24 = vcombine.low %v1116_v51, %v1123_v13  ;;  %v4714_v20 = vcombine.high %v1116_v51, %v1123_v13  ;;  %v1276_v31 = vcombine.low %v6194_v43, %v6200_v45  ;;  %v1344_v36 = vcombine.low %v6210_v56, %v6216_v48  ;;  %v6358_v8 = vpop.permute.xlu1 %2100 }
 0x3c5   : > { %v1364_v37 = vcombine.low %v1132_v0, %v1139_v21  ;;  %v4715_v38 = vcombine.high %v1132_v0, %v1139_v21  ;;  %v1145_v23 = vcombine.high %v6032_v30, %v6254_v26  ;;  %v1869_v59 = vcombine.high %v6128_v60, %v6131_v61 }
 0x3c6   : > { %v6332_v62 = vrot.slane %v1348_v24, %v6079_v46  ;;  %v6335_v29 = vrot.slane %v4714_v20, %v6079_v46  ;;  %v1484_v52 = vpack.c.bf16 %v1344_v36, %v1276_v31  ;;  %v1937_v1 = vcombine.high %v6242_v6, %v6257_v7 }
 0x3c7   : > { %v6340_v2 = vrot.slane %v1364_v37, %v6079_v46  ;;  %v6343_v4 = vrot.slane %v4715_v38, %v6079_v46  ;;  %v1278_v30 = vcombine.low %v6197_v44, %v6203_v47  ;;  %v1346_v60 = vcombine.low %v6213_v57, %v6221_v50 }
 0x3c8   : > { %v6350_v61 = vrot.slane %v2024_v42, %v6079_v46  ;;  %v6353_v26 = vrot.slane %v4725_v12, %v6079_v46  ;;  %4885 = vmatmul.mubr.msk.bf16.vlgmr.msra.gmra.mrb[4].mxu1 %vm2676_vm2, %v1484_v52  ;;  %v2077_v6 = vpack.c.bf16 %v1937_v1, %v1869_v59  ;;  %v1160_v7 = vcombine.low %v6207_v54, %v6289_v49  ;;  %v6389_v59 = vpop.permute.xlu1 %2094 }
 0x3c9   : > { %v1152_v5 = vrot.slane %v1144_v39, %v6079_v46  ;;  %v1159_v9 = vrot.slane %v1145_v23, %v6079_v46  ;;  %v1486_v27 = vpack.c.bf16 %v1346_v60, %v1278_v30  ;;  %v1161_v55 = vcombine.high %v6207_v54, %v6289_v49  ;;  %4890 = vmatprep.mubr.msk.bf16.mxu1 %vm5557_vm1, %v5556_v28 }
 0x3ca   : > { %v1380_v17 = vcombine.low %v6332_v62, %v6335_v29  ;;  %v1381_v41 = vcombine.high %v6332_v62, %v6335_v29  ;;  %v2728_v42 = vsel %vm2676_vm2, %v2077_v6, 0  ;;  %v1168_v39 = vrot.slane %v1160_v7, %v6079_v46 }
 0x3cb   : > { %v1396_v12 = vcombine.low %v6340_v2, %v6343_v4  ;;  %v1397_v54 = vcombine.high %v6340_v2, %v6343_v4  ;;  %4889 = vmatpush3.bf16.xpose.msra.mxu1 %v2728_v42  ;;  %4897 = vmatmul.mubr.msk.bf16.vlgmr.msra.gmra.mrb[8].mxu0 %vm2676_vm2, %v1486_v27  ;;  %v1175_v49 = vrot.slane %v1161_v55, %v6079_v46  ;;  %v2089_v4 = vpop.permute.xlu0 %2088 }
 0x3cc   : > { %v1176_v51 = vcombine.low %v1152_v5, %v1168_v39  ;;  %v1177_v13 = vcombine.high %v1152_v5, %v1168_v39  ;;  %v2276_v0 = vcombine.low %v2093_v22, %v2117_v11  ;;  %v2277_v21 = vcombine.high %v2093_v22, %v2117_v11  ;;  %4900 = vmatprep.subr.bf16.mxu1 %v5556_v28 }
 0x3cd   : > { %v1192_v24 = vcombine.low %v1159_v9, %v1175_v49  ;;  %v1193_v20 = vcombine.high %v1159_v9, %v1175_v49  ;;  %v2260_v31 = vcombine.low %v6041_v32, %v2105_v63  ;;  %v2261_v36 = vcombine.high %v6041_v32, %v2105_v63  ;;  %4908 = vmatprep.mubr.msk.bf16.mxu0 %vm5557_vm1, %v5556_v28 }
 0x3ce   : > { %v6384_v37 = vrot.slane %v1380_v17, %v6083_v53  ;;  %v1184_v38 = vrot.slane %v1176_v51, %v6083_v53  ;;  %v1191_v23 = vrot.slane %v1177_v13, %v6083_v53  ;;  %v2284_v22 = vrot.slane %v2276_v0, %v6079_v46  ;;  %v6410_v0 = vpop.permute.xlu1 %2106 }
 0x3cf   : > { %v1200_v62 = vrot.slane %v1192_v24, %v6083_v53  ;;  %v1207_v29 = vrot.slane %v1193_v20, %v6083_v53  ;;  %v2268_v32 = vrot.slane %v2260_v31, %v6079_v46  ;;  %v2275_v63 = vrot.slane %v2261_v36, %v6079_v46 }
 0x3d0   : > { %v1416_v52 = vcombine.low %v1184_v38, %v1191_v23  ;;  %v4716_v1 = vcombine.high %v1184_v38, %v1191_v23  ;;  %v2291_v2 = vrot.slane %v2277_v21, %v6079_v46  ;;  %v1345_v30 = vcombine.high %v6210_v56, %v6216_v48 }
 0x3d1   : > { %v1432_v60 = vcombine.low %v1200_v62, %v1207_v29  ;;  %v4717_v6 = vcombine.high %v1200_v62, %v1207_v29  ;;  %v2292_v7 = vcombine.low %v2268_v32, %v2284_v22  ;;  %v2293_v5 = vcombine.high %v2268_v32, %v2284_v22  ;;  %v2113_v62 = vpop.permute.xlu0 %2112 }
 0x3d2   : > { %v1423_v9 = vrot.slane %v1416_v52, %v6079_v46  ;;  %v1431_v27 = vrot.slane %v4716_v1, %v6079_v46  ;;  %v2308_v55 = vcombine.low %v2275_v63, %v2291_v2  ;;  %v2309_v11 = vcombine.high %v2275_v63, %v2291_v2 }
 0x3d3   : > { %v1439_v17 = vrot.slane %v1432_v60, %v6079_v46  ;;  %v1447_v42 = vrot.slane %v4717_v6, %v6079_v46  ;;  %v2300_v39 = vrot.slane %v2292_v7, %v6083_v53  ;;  %v2307_v49 = vrot.slane %v2293_v5, %v6083_v53 }
 0x3d4   : > { %v1448_v51 = vcombine.low %v1423_v9, %v1431_v27  ;;  %v1449_v56 = vcombine.high %v1423_v9, %v1431_v27  ;;  %v6405_v48 = vrot.slane %v2308_v55, %v6083_v53  ;;  %v6408_v13 = vrot.slane %v2309_v11, %v6083_v53 }
 0x3d5   : > { %v1464_v21 = vcombine.low %v1439_v17, %v1447_v42  ;;  %v1465_v24 = vcombine.high %v1439_v17, %v1447_v42  ;;  %v2532_v20 = vcombine.low %v2300_v39, %v2307_v49  ;;  %v4730_v31 = vcombine.high %v2300_v39, %v2307_v49 }
 0x3d6   : > { %v6413_v36 = vrot.slane %v1381_v41, %v6083_v53  ;;  %v2548_v38 = vcombine.low %v6405_v48, %v6408_v13  ;;  %v4731_v23 = vcombine.high %v6405_v48, %v6408_v13  ;;  %v1277_v22 = vcombine.high %v6194_v43, %v6200_v45 }
 0x3d7   : > { %v6422_v29 = vrot.slane %v1396_v12, %v6083_v53  ;;  %v6425_v32 = vrot.slane %v1397_v54, %v6083_v53  ;;  %v6428_v63 = vrot.slane %v1448_v51, %v6083_v53  ;;  %v6431_v41 = vrot.slane %v1449_v56, %v6083_v53 }
 0x3d8   : > { %v6434_v52 = vrot.slane %v1464_v21, %v6083_v53  ;;  %v6437_v1 = vrot.slane %v1465_v24, %v6083_v53  ;;  %v1485_v43 = vpack.c.bf16 %v1345_v30, %v1277_v22  ;;  %v1871_v45 = vcombine.high %v6264_v18, %v6267_v19  ;;  %v6454_v19 = vpop.permute.xlu1 %2090 }
 0x3d9   : > { %v1939_v12 = vcombine.high %v6270_v25, %v6273_v40  ;;  %v2124_v54 = vcombine.low %v6051_v33, %v6358_v8  ;;  %v2125_v2 = vcombine.high %v6051_v33, %v6358_v8  ;;  %v2140_v60 = vcombine.low %v2089_v4, %v2113_v62 }
 0x3da   : > { %4891 = vmatmul.mubr.msk.bf16.vlgmr.msra.gmra.mrb[8].mxu1 %vm2676_vm2, %v1485_v43  ;;  %v2141_v6 = vcombine.high %v2089_v4, %v2113_v62  ;;  %v1972_v7 = vcombine.low %v6238_v3, %v6302_v58  ;;  %v1988_v30 = vcombine.low %v6305_v10, %v6309_v16  ;;  %v2040_v18 = vcombine.low %v6316_v14, %v6319_v15 }
 0x3db   : > { %v2079_v25 = vpack.c.bf16 %v1939_v12, %v1871_v45  ;;  %v2132_v40 = vrot.slane %v2124_v54, %v6079_v46  ;;  %v2139_v33 = vrot.slane %v2125_v2, %v6079_v46  ;;  %v2148_v8 = vrot.slane %v2140_v60, %v6079_v46  ;;  %4902 = vmatprep.mubr.msk.bf16.mxu1 %vm5557_vm1, %v5556_v28 }
 0x3dc   : > { %v2155_v4 = vrot.slane %v2141_v6, %v6079_v46  ;;  %v1980_v5 = vrot.slane %v1972_v7, %v6083_v53  ;;  %v1996_v9 = vrot.slane %v1988_v30, %v6083_v53  ;;  %v2048_v27 = vrot.slane %v2040_v18, %v6083_v53  ;;  %v2103_v43 = vpop.permute.xlu1 %2102 }
 0x3dd   : > { %v2822_v55 = vsel %vm2676_vm2, %v2079_v25, 0  ;;  %v2156_v11 = vcombine.low %v2132_v40, %v2148_v8  ;;  %v2157_v17 = vcombine.high %v2132_v40, %v2148_v8  ;;  %v2056_v42 = vcombine.low %v6350_v61, %v6353_v26 }
 0x3de   : > { %v6469_v39 = vrot.slane %v2532_v20, %v6079_v46  ;;  %v6472_v49 = vrot.slane %v4730_v31, %v6079_v46  ;;  %4901 = vmatpush3.bf16.xpose.msra.mxu1 %v2822_v55  ;;  %v2172_v51 = vcombine.low %v2139_v33, %v2155_v4  ;;  %v2173_v56 = vcombine.high %v2139_v33, %v2155_v4 }
 0x3df   : > { %v2164_v48 = vrot.slane %v2156_v11, %v6083_v53  ;;  %v2171_v13 = vrot.slane %v2157_v17, %v6083_v53  ;;  %v2064_v21 = vrot.slane %v2056_v42, %v6083_v53  ;;  %4912 = vmatprep.subr.bf16.mxu1 %v5556_v28  ;;  %v1347_v24 = vcombine.high %v6213_v57, %v6221_v50 }
 0x3e0   : > { %v6481_v20 = vrot.slane %v2548_v38, %v6079_v46  ;;  %v2180_v31 = vrot.slane %v2172_v51, %v6083_v53  ;;  %v2187_v22 = vrot.slane %v2173_v56, %v6083_v53  ;;  %v2004_v62 = vcombine.low %v1980_v5, %v1996_v9  ;;  %v2115_v11 = vpop.permute.xlu1 %2114 }
 0x3e1   : > { %v2396_v45 = vcombine.low %v2164_v48, %v2171_v13  ;;  %v4726_v12 = vcombine.high %v2164_v48, %v2171_v13  ;;  %v2072_v54 = vcombine.low %v2048_v27, %v2064_v21  ;;  %v1279_v2 = vcombine.high %v6197_v44, %v6203_v47 }
 0x3e2   : > { %v2412_v60 = vcombine.low %v2180_v31, %v2187_v22  ;;  %v4727_v6 = vcombine.high %v2180_v31, %v2187_v22  ;;  %v2005_v7 = vcombine.high %v1980_v5, %v1996_v9  ;;  %v2073_v30 = vcombine.high %v2048_v27, %v2064_v21 }
 0x3e3   : > { %v6488_v57 = vrot.slane %v4731_v23, %v6079_v46  ;;  %v6491_v50 = vrot.slane %v2396_v45, %v6079_v46  ;;  %v2080_v38 = vpack.c.bf16 %v2072_v54, %v2004_v62  ;;  %v1487_v18 = vpack.c.bf16 %v1347_v24, %v1279_v2 }
 0x3e4   : > { %v6494_v25 = vrot.slane %v4726_v12, %v6079_v46  ;;  %v6497_v40 = vrot.slane %v2412_v60, %v6079_v46  ;;  %v6500_v44 = vrot.slane %v4727_v6, %v6079_v46  ;;  %v2081_v47 = vpack.c.bf16 %v2073_v30, %v2005_v7 }
 0x3e5   : > { %v2869_v33 = vsel %vm2676_vm2, %v2080_v38, 0  ;;  %4903 = vmatmul.mubr.msk.bf16.vlgmr.msra.gmra.mrb[12].mxu1 %vm2676_vm2, %v1487_v18  ;;  %v1412_v23 = vcombine.low %v6384_v37, %v6422_v29  ;;  %v1480_v8 = vcombine.low %v6428_v63, %v6434_v52  ;;  %v1413_v4 = vcombine.high %v6384_v37, %v6422_v29 }
 0x3e6   : > { %4907 = vmatpush3.bf16.xpose.msra.mxu0 %v2869_v33  ;;  %v2916_v5 = vsel %vm2676_vm2, %v2081_v47, 0  ;;  %4914 = vmatprep.mubr.msk.bf16.mxu1 %vm5557_vm1, %v5556_v28  ;;  %v1481_v9 = vcombine.high %v6428_v63, %v6434_v52  ;;  %v1973_v27 = vcombine.high %v6238_v3, %v6302_v58  ;;  %v1989_v55 = vcombine.high %v6305_v10, %v6309_v16 }
 0x3e7   : > { %4913 = vmatpush3.bf16.xpose.msra.mxu1 %v2916_v5  ;;  %4918 = vmatprep.subr.bf16.mxu0 %v5556_v28  ;;  %v1488_v37 = vpack.c.bf16 %v1480_v8, %v1412_v23  ;;  %v2041_v29 = vcombine.high %v6316_v14, %v6319_v15  ;;  %v2057_v17 = vcombine.high %v6350_v61, %v6353_v26 }
 0x3e8   : > { %4924 = vmatprep.subr.bf16.mxu1 %v5556_v28  ;;  %v1489_v63 = vpack.c.bf16 %v1481_v9, %v1413_v4  ;;  %v1987_v52 = vrot.slane %v1973_v27, %v6083_v53  ;;  %v2003_v3 = vrot.slane %v1989_v55, %v6083_v53  ;;  %v2192_v58 = vcombine.low %v6071_v35, %v2103_v43 }
 0x3e9   : > { %v2055_v10 = vrot.slane %v2041_v29, %v6083_v53  ;;  %v2071_v16 = vrot.slane %v2057_v17, %v6083_v53  ;;  %v2193_v42 = vcombine.high %v6071_v35, %v2103_v43  ;;  %v2208_v14 = vcombine.low %v6454_v19, %v2115_v11 }
 0x3ea   : > { %v2006_v15 = vcombine.low %v1987_v52, %v2003_v3  ;;  %v2007_v51 = vcombine.high %v1987_v52, %v2003_v3  ;;  %v2200_v61 = vrot.slane %v2192_v58, %v6079_v46  ;;  %v2209_v26 = vcombine.high %v6454_v19, %v2115_v11 }
 0x3eb   : > { %v2074_v56 = vcombine.low %v2055_v10, %v2071_v16  ;;  %v2075_v48 = vcombine.high %v2055_v10, %v2071_v16  ;;  %v2207_v13 = vrot.slane %v2193_v42, %v6079_v46  ;;  %v2216_v21 = vrot.slane %v2208_v14, %v6079_v46 }
 0x3ec   : > { %v2223_v24 = vrot.slane %v2209_v26, %v6079_v46  ;;  %v1414_v31 = vcombine.low %v6413_v36, %v6425_v32  ;;  %v1482_v35 = vcombine.low %v6431_v41, %v6437_v1  ;;  %v1415_v22 = vcombine.high %v6413_v36, %v6425_v32 }
 0x3ed   : > { %4909 = vmatmul.mubr.msk.bf16.vlgmr.msra.gmra.mrb[12].mxu0 %vm2676_vm2, %v1488_v37  ;;  %v2082_v19 = vpack.c.bf16 %v2074_v56, %v2006_v15  ;;  %v2083_v62 = vpack.c.bf16 %v2075_v48, %v2007_v51  ;;  %v2224_v43 = vcombine.low %v2200_v61, %v2216_v21  ;;  %v2225_v45 = vcombine.high %v2200_v61, %v2216_v21 }
 0x3ee   : > { %4915 = vmatmul.mubr.msk.bf16.vlgmr.msra.gmra.mrb[16].mxu1 %vm2676_vm2, %v1489_v63  ;;  %v2240_v12 = vcombine.low %v2207_v13, %v2223_v24  ;;  %v2241_v54 = vcombine.high %v2207_v13, %v2223_v24  ;;  %4920 = vmatprep.mubr.msk.bf16.mxu0 %vm5557_vm1, %v5556_v28  ;;  %v1490_v2 = vpack.c.bf16 %v1482_v35, %v1414_v31 }
 0x3ef   : > { %v2963_v60 = vsel %vm2676_vm2, %v2082_v19, 0  ;;  %v3010_v6 = vsel %vm2676_vm2, %v2083_v62, 0  ;;  %v2232_v36 = vrot.slane %v2224_v43, %v6083_v53  ;;  %v2239_v32 = vrot.slane %v2225_v45, %v6083_v53  ;;  %4926 = vmatprep.mubr.msk.bf16.mxu1 %vm5557_vm1, %v5556_v28 }
 0x3f0   : > { %4919 = vmatpush3.bf16.xpose.msra.mxu0 %v2963_v60  ;;  %4925 = vmatpush3.bf16.xpose.msra.mxu1 %v3010_v6  ;;  %v2248_v7 = vrot.slane %v2240_v12, %v6083_v53  ;;  %v2255_v30 = vrot.slane %v2241_v54, %v6083_v53  ;;  %v1483_v38 = vcombine.high %v6431_v41, %v6437_v1  ;;  %v4742_v54 = vld [vmem:[%s5916_s25] ss:$0 sm:$0xff] }
 0x3f1   : > { %v2464_v18 = vcombine.low %v2232_v36, %v2239_v32  ;;  %v4728_v47 = vcombine.high %v2232_v36, %v2239_v32  ;;  %4930 = vmatprep.subr.bf16.mxu0 %v5556_v28  ;;  %4936 = vmatprep.subr.bf16.mxu1 %v5556_v28  ;;  %v2428_v33 = vcombine.low %v6491_v50, %v6494_v25 }
 0x3f2   : > { %v2480_v23 = vcombine.low %v2248_v7, %v2255_v30  ;;  %v4729_v8 = vcombine.high %v2248_v7, %v2255_v30  ;;  %v1491_v4 = vpack.c.bf16 %v1483_v38, %v1415_v22  ;;  %v2444_v5 = vcombine.low %v6497_v40, %v6500_v44 }
 0x3f3   : > { %v2471_v9 = vrot.slane %v2464_v18, %v6079_v46  ;;  %v2479_v27 = vrot.slane %v4728_v47, %v6079_v46  ;;  %v2436_v41 = vrot.slane %v2428_v33, %v6083_v53  ;;  %v2429_v1 = vcombine.high %v6491_v50, %v6494_v25 }
 0x3f4   : > { %v2487_v55 = vrot.slane %v2480_v23, %v6079_v46  ;;  %v2495_v11 = vrot.slane %v4729_v8, %v6079_v46  ;;  %v2452_v37 = vrot.slane %v2444_v5, %v6083_v53  ;;  %v2445_v29 = vcombine.high %v6497_v40, %v6500_v44 }
 0x3f5   : > { %v2496_v17 = vcombine.low %v2471_v9, %v2479_v27  ;;  %v2443_v63 = vrot.slane %v2429_v1, %v6083_v53  ;;  %v2497_v52 = vcombine.high %v2471_v9, %v2479_v27  ;;  %v2564_v3 = vcombine.low %v6469_v39, %v6472_v49 }
 0x3f6   : > { %v2460_v58 = vcombine.low %v2436_v41, %v2452_v37  ;;  %v2512_v10 = vcombine.low %v2487_v55, %v2495_v11  ;;  %v2459_v50 = vrot.slane %v2445_v29, %v6083_v53  ;;  %v2513_v40 = vcombine.high %v2487_v55, %v2495_v11 }
 0x3f7   : > { %4921 = vmatmul.mubr.msk.bf16.vlgmr.msra.gmra.mrb[16].mxu0 %vm2676_vm2, %v1490_v2  ;;  %4927 = vmatmul.mubr.msk.bf16.vlgmr.msra.gmra.mrb[20].mxu1 %vm2676_vm2, %v1491_v4  ;;  %v2504_v25 = vrot.slane %v2496_v17, %v6083_v53  ;;  %v2511_v16 = vrot.slane %v2497_v52, %v6083_v53  ;;  %v6588_v51 = vrot.slane %v2564_v3, %v6083_v53  ;;  %v4743_v3 = vld [vmem:[%s5916_s25 + $0x1] ss:$0 sm:$0xff] }
 0x3f8   : > { %v2520_v44 = vrot.slane %v2512_v10, %v6083_v53  ;;  %4932 = vmatprep.mubr.msk.bf16.mxu0 %vm5557_vm1, %v5556_v28  ;;  %v2462_v42 = vcombine.low %v2443_v63, %v2459_v50  ;;  %4938 = vmatprep.mubr.msk.bf16.mxu1 %vm5557_vm1, %v5556_v28  ;;  %v2463_v14 = vcombine.high %v2443_v63, %v2459_v50 }
 0x3f9   : > { %v2527_v15 = vrot.slane %v2513_v40, %v6083_v53  ;;  %v2580_v61 = vcombine.low %v6481_v20, %v6488_v57  ;;  %v2565_v26 = vcombine.high %v6469_v39, %v6472_v49  ;;  %v2461_v48 = vcombine.high %v2436_v41, %v2452_v37 }
 0x3fa   : > { %v2528_v56 = vcombine.low %v2504_v25, %v2520_v44  ;;  %v2529_v13 = vcombine.high %v2504_v25, %v2520_v44  ;;  %v2581_v21 = vcombine.high %v6481_v20, %v6488_v57 }
 0x3fb   : > { %v2530_v24 = vcombine.low %v2511_v16, %v2527_v15  ;;  %v2531_v31 = vcombine.high %v2511_v16, %v2527_v15  ;;  %v6597_v35 = vrot.slane %v2580_v61, %v6083_v53  ;;  %v6600_v22 = vrot.slane %v2565_v26, %v6083_v53 }
 0x3fc   : > { %v2668_v19 = vpack.c.bf16 %v2528_v56, %v2460_v58  ;;  %v2669_v62 = vpack.c.bf16 %v2529_v13, %v2461_v48  ;;  %v6603_v43 = vrot.slane %v2581_v21, %v6083_v53 }
 0x3fd   : > { %v6605_v39 = vpack.c.bf16 %v2530_v24, %v2462_v42  ;;  %v6607_v49 = vpack.c.bf16 %v2531_v31, %v2463_v14  ;;  %v2596_v20 = vcombine.low %v6588_v51, %v6597_v35  ;;  %v2597_v57 = vcombine.high %v6588_v51, %v6597_v35 }
 0x3fe   : > { %4931 = vmatpush3.bf16.msra.mxu0 %v2668_v19  ;;  %4937 = vmatpush3.bf16.msra.mxu1 %v2669_v62  ;;  %v2598_v45 = vcombine.low %v6600_v22, %v6603_v43  ;;  %v2599_v12 = vcombine.high %v6600_v22, %v6603_v43 }
 0x3ff   : > { %4942 = vmatprep.subr.bf16.mxu0 %v5556_v28  ;;  %4948 = vmatprep.subr.bf16.mxu1 %v5556_v28 }
 0x49b   : > { %v2717_v2 = vpop.f32.mrb[4].mxu1 }
 0x49c   : > { %v6620_v60 = vadd.f32 %v4742_v54, %v2717_v2  ;;  %v4886_v6 = vpop.f32.mrb[5].mxu1 }
 0x49d   : > { %v2720_v36 = vpop.f32.mrb[6].mxu1 }
 0x49e   : > { %v2811_v32 = vpop.f32.mrb[8].mxu0  ;;  %v6622_v7 = vadd.f32 %v4742_v54, %v2720_v36  ;;  %v4887_v30 = vpop.f32.mrb[7].mxu1  ;;  %v3081_v38 = vsel %vm2676_vm2, %v6620_v60, -inf }
 0x49f   : > { %v6626_v18 = vadd.f32 %v4742_v54, %v2811_v32  ;;  %v4898_v47 = vpop.f32.mrb[9].mxu0  ;;  %3082 = vmax.xlane.f32.xlu0 %v3081_v38 }
 0x4a0   : > { %v2814_v33 = vpop.f32.mrb[10].mxu0  ;;  %v3084_v23 = vsel %vm2676_vm2, %v6622_v7, -inf }
 0x4a1   : > { %v6630_v8 = vadd.f32 %v4742_v54, %v2814_v33  ;;  %v4899_v4 = vpop.f32.mrb[11].mxu0  ;;  %3085 = vmax.xlane.f32.xlu1 %v3084_v23  ;;  %v3093_v5 = vsel %vm2676_vm2, %v6626_v18, -inf }
 0x4a3   : > { %3094 = vmax.xlane.f32.xlu0 %v3093_v5  ;;  %v3096_v9 = vsel %vm2676_vm2, %v6630_v8, -inf }
 0x4a5   : > { %3097 = vmax.xlane.f32.xlu1 %v3096_v9 }
 0x4ad   : > { %v2764_v27 = vpop.f32.mrb[8].mxu1 }
 0x4ae   : > { %v6636_v41 = vadd.f32 %v4742_v54, %v2764_v27  ;;  %v4892_v1 = vpop.f32.mrb[9].mxu1 }
 0x4af   : > { %v2767_v55 = vpop.f32.mrb[10].mxu1 }
 0x4b0   : > { %v4893_v11 = vpop.f32.mrb[11].mxu1  ;;  %v3087_v37 = vsel %vm2676_vm2, %v6636_v41, -inf  ;;  %v6643_v44 = vadd.f32 %v4742_v54, %v2767_v55 }
 0x4b1   : > { %3088 = vmax.xlane.f32.xlu0 %v3087_v37 }
 0x4b2   : > { %v3090_v21 = vsel %vm2676_vm2, %v6643_v44, -inf }
 0x4b8   : > { %v2858_v29 = vpop.f32.mrb[12].mxu1 }
 0x4b9   : > { %v4904_v17 = vpop.f32.mrb[13].mxu1  ;;  %v6653_v13 = vadd.f32 %v4742_v54, %v2858_v29 }
 0x4ba   : > { %v2861_v63 = vpop.f32.mrb[14].mxu1 }
 0x4bb   : > { %v4905_v52 = vpop.f32.mrb[15].mxu1  ;;  %v6659_v62 = vadd.f32 %v4742_v54, %v2861_v63  ;;  %v3099_v36 = vsel %vm2676_vm2, %v6653_v13, -inf }
 0x4bd   : > { %v3102_v23 = vsel %vm2676_vm2, %v6659_v62, -inf }
 0x4c0   : > { %v2905_v58 = vpop.f32.mrb[12].mxu0 }
 0x4c1   : > { %v6641_v10 = vadd.f32 %v4743_v3, %v2905_v58  ;;  %v2952_v50 = vpop.f32.mrb[16].mxu1  ;;  %v4910_v25 = vpop.f32.mrb[13].mxu0 }
 0x4c2   : > { %v4916_v16 = vpop.f32.mrb[17].mxu1  ;;  %v2908_v40 = vpop.f32.mrb[14].mxu0  ;;  %v6663_v33 = vadd.f32 %v4743_v3, %v2952_v50 }
 0x4c3   : > { %v6645_v42 = vadd.f32 %v4743_v3, %v2908_v40  ;;  %v2955_v14 = vpop.f32.mrb[18].mxu1  ;;  %v4911_v15 = vpop.f32.mrb[15].mxu0  ;;  %v3105_v61 = vsel %vm2676_vm2, %v6641_v10, -inf }
 0x4c4   : > { %v4917_v26 = vpop.f32.mrb[19].mxu1  ;;  %3106 = vmax.xlane.f32.xlu0 %v3105_v61  ;;  %v6649_v56 = vadd.f32 %v4743_v3, %v2955_v14  ;;  %v3111_v54 = vsel %vm2676_vm2, %v6663_v33, -inf }
 0x4c5   : > { %v3108_v48 = vsel %vm2676_vm2, %v6645_v42, -inf }
 0x4c6   : > { %3109 = vmax.xlane.f32.xlu1 %v3108_v48  ;;  %v3114_v24 = vsel %vm2676_vm2, %v6649_v56, -inf }
 0x4c8   : > { %3091 = vmax.xlane.f32.xlu0 %v3090_v21 }
 0x4ca   : > { %v3046_v31 = vpop.f32.mrb[20].mxu1  ;;  %v2999_v19 = vpop.f32.mrb[16].mxu0  ;;  %3115 = vmax.xlane.f32.xlu1 %v3114_v24 }
 0x4cb   : > { %v4922_v2 = vpop.f32.mrb[17].mxu0  ;;  %v4928_v6 = vpop.f32.mrb[21].mxu1  ;;  %v6667_v4 = vadd.f32 %v4743_v3, %v2999_v19  ;;  %v6671_v5 = vadd.f32 %v4743_v3, %v3046_v31 }
 0x4cc   : > { %v3049_v32 = vpop.f32.mrb[22].mxu1  ;;  %v3002_v30 = vpop.f32.mrb[18].mxu0  ;;  %3100 = vmax.xlane.f32.xlu0 %v3099_v36 }
 0x4cd   : > { %v4923_v38 = vpop.f32.mrb[19].mxu0  ;;  %v4929_v47 = vpop.f32.mrb[23].mxu1  ;;  %v3117_v9 = vsel %vm2676_vm2, %v6667_v4, -inf  ;;  %v6675_v27 = vadd.f32 %v4743_v3, %v3049_v32  ;;  %v3123_v1 = vsel %vm2676_vm2, %v6671_v5, -inf  ;;  %v6683_v11 = vadd.f32 %v4743_v3, %v3002_v30 }
 0x4cf   : > { %v3126_v55 = vsel %vm2676_vm2, %v6675_v27, -inf  ;;  %v3120_v37 = vsel %vm2676_vm2, %v6683_v11, -inf }
 0x4d0   : > { %3103 = vmax.xlane.f32.xlu0 %v3102_v23 }
 0x4d4   : > { %3112 = vmax.xlane.f32.xlu0 %v3111_v54 }
 0x4d8   : > { %3118 = vmax.xlane.f32.xlu0 %v3117_v9 }
 0x4db   : > { %2118 = vrot.lane.b32.xlu1 %v6065_v34, %s5555_s15 }
 0x4dc   : > { %3124 = vmax.xlane.f32.xlu0 %v3123_v1 }
 0x4e0   : > { %3127 = vmax.xlane.f32.xlu0 %v3126_v55 }
 0x4ff   : > { %3121 = vmax.xlane.f32.xlu1 %v3120_v37  ;;  %v2328_v37 = vcombine.low %v6065_v34, %v6410_v0 }
 0x52c   : > { %v3083_v29 = vpop.xlane.xlu0 %3082 }
 0x52d   : > { %v3129_v17 = vsub.f32 %v6620_v60, %v3083_v29  ;;  %v2329_v29 = vcombine.high %v6065_v34, %v6410_v0 }
 0x52e   : > { %v3086_v63 = vpop.xlane.xlu1 %3085 }
 0x52f   : > { %v3145_v52 = vmul.f32 1.442695, %v3129_v17  ;;  %v3130_v58 = vsub.f32 %v6622_v7, %v3086_v63 }
 0x530   : > { %v3095_v50 = vpop.xlane.xlu0 %3094 }
 0x531   : > { %5180 = vpow2.f32 %v3145_v52  ;;  %v3147_v25 = vmul.f32 1.442695, %v3130_v58  ;;  %v3133_v16 = vsub.f32 %v6626_v18, %v3095_v50  ;;  %v2336_v58 = vrot.slane %v2328_v37, %v6079_v46 }
 0x532   : > { %v3098_v40 = vpop.xlane.xlu1 %3097  ;;  %v2343_v50 = vrot.slane %v2329_v29, %v6079_v46 }
 0x533   : > { %5182 = vpow2.f32 %v3147_v25  ;;  %v3153_v3 = vmul.f32 1.442695, %v3133_v16  ;;  %v3134_v14 = vsub.f32 %v6630_v8, %v3098_v40 }
 0x535   : > { %5184 = vpow2.f32 %v3153_v3  ;;  %v3155_v15 = vmul.f32 1.442695, %v3134_v14 }
 0x537   : > { %5186 = vpow2.f32 %v3155_v15 }
 0x53b   : > { %v5181_v61 = vpop.eup %5180 }
 0x53c   : > { %v3177_v60 = vsel %vm2676_vm2, %v5181_v61, 0.0 }
 0x53d   : > { %v5183_v26 = vpop.eup %5182  ;;  %3178 = vadd.xlane.f32.xlu0 %v3177_v60 }
 0x53e   : > { %v3089_v48 = vpop.xlane.xlu0 %3088  ;;  %v3180_v7 = vsel %vm2676_vm2, %v5183_v26, 0.0  ;;  %v3241_v21 = vpack.c.bf16 %v5183_v26, %v5181_v61 }
 0x53f   : > { %v5185_v24 = vpop.eup %5184  ;;  %v3131_v18 = vsub.f32 %v6636_v41, %v3089_v48  ;;  %3181 = vadd.xlane.f32.xlu1 %v3180_v7 }
 0x540   : > { %4933 = vmatmul.mubr.msk.bf16.vlgmr.msra.gmra.mrb[20].mxu0 %vm2676_vm2, %v3241_v21  ;;  %v3189_v8 = vsel %vm2676_vm2, %v5185_v24, 0.0 }
 0x541   : > { %v5187_v31 = vpop.eup %5186  ;;  %v3149_v19 = vmul.f32 1.442695, %v3131_v18  ;;  %4943 = vmatpush3.bf16.msra.mxu0 %v6605_v39  ;;  %3190 = vadd.xlane.f32.xlu0 %v3189_v8 }
 0x542   : > { %v3192_v2 = vsel %vm2676_vm2, %v5187_v31, 0.0  ;;  %4944 = vmatprep.mubr.msk.bf16.mxu0 %vm5557_vm1, %v5556_v28  ;;  %4954 = vmatprep.subr.bf16.mxu0 %v5556_v28  ;;  %v3243_v41 = vpack.c.bf16 %v5187_v31, %v5185_v24 }
 0x543   : > { %5188 = vpow2.f32 %v3149_v19  ;;  %3193 = vadd.xlane.f32.xlu1 %v3192_v2 }
 0x548   : > { %4945 = vmatmul.mubr.msk.bf16.vlgmr.msra.gmra.mrb[24].mxu0 %vm2676_vm2, %v3243_v41 }
 0x549   : > { %4956 = vmatprep.mubr.msk.bf16.mxu0 %vm5557_vm1, %v5556_v28 }
 0x54d   : > { %v6704_v6 = vpop.eup %5188 }
 0x54e   : > { %v3183_v39 = vsel %vm2676_vm2, %v6704_v6, 0.0 }
 0x54f   : > { %3184 = vadd.xlane.f32.xlu0 %v3183_v39 }
 0x551   : > { %v3107_v36 = vpop.xlane.xlu0 %3106 }
 0x552   : > { %v3137_v32 = vsub.f32 %v6641_v10, %v3107_v36 }
 0x553   : > { %v3110_v30 = vpop.xlane.xlu1 %3109 }
 0x554   : > { %v3161_v38 = vmul.f32 1.442695, %v3137_v32  ;;  %v3138_v47 = vsub.f32 %v6645_v42, %v3110_v30 }
 0x555   : > { %v3092_v23 = vpop.xlane.xlu0 %3091 }
 0x556   : > { %5190 = vpow2.f32 %v3161_v38  ;;  %v3132_v54 = vsub.f32 %v6643_v44, %v3092_v23  ;;  %v3163_v9 = vmul.f32 1.442695, %v3138_v47 }
 0x557   : > { %v3116_v1 = vpop.xlane.xlu1 %3115 }
 0x558   : > { %v3151_v55 = vmul.f32 1.442695, %v3132_v54 }
 0x559   : > { %v3101_v17 = vpop.xlane.xlu0 %3100 }
 0x55a   : > { %5192 = vpow2.f32 %v3151_v55  ;;  %v3135_v10 = vsub.f32 %v6653_v13, %v3101_v17 }
 0x55b   : > { %5194 = vpow2.f32 %v3163_v9  ;;  %v2119_v63 = vpop.permute.xlu1 %2118 }
 0x55c   : > { %v3157_v42 = vmul.f32 1.442695, %v3135_v10  ;;  %v2344_v52 = vcombine.low %v6389_v59, %v2119_v63  ;;  %v2345_v44 = vcombine.high %v6389_v59, %v2119_v63  ;;  %v3140_v59 = vsub.f32 %v6649_v56, %v3116_v1 }
 0x55d   : > { %v3104_v25 = vpop.xlane.xlu0 %3103 }
 0x55e   : > { %5196 = vpow2.f32 %v3157_v42  ;;  %v2352_v16 = vrot.slane %v2344_v52, %v6079_v46  ;;  %v2359_v34 = vrot.slane %v2345_v44, %v6079_v46  ;;  %v3136_v0 = vsub.f32 %v6659_v62, %v3104_v25 }
 0x55f   : > { %v3167_v41 = vmul.f32 1.442695, %v3140_v59 }
 0x560   : > { %v6723_v13 = vpop.eup %5190  ;;  %v2360_v40 = vcombine.low %v2336_v58, %v2352_v16  ;;  %v2361_v3 = vcombine.high %v2336_v58, %v2352_v16  ;;  %v2376_v14 = vcombine.low %v2343_v50, %v2359_v34  ;;  %v2377_v15 = vcombine.high %v2343_v50, %v2359_v34 }
 0x561   : > { %v3159_v61 = vmul.f32 1.442695, %v3136_v0  ;;  %v3113_v60 = vpop.xlane.xlu0 %3112  ;;  %v3201_v26 = vsel %vm2676_vm2, %v6723_v13, 0.0 }
 0x562   : > { %v2368_v48 = vrot.slane %v2360_v40, %v6083_v53  ;;  %v2375_v7 = vrot.slane %v2361_v3, %v6083_v53  ;;  %v2384_v21 = vrot.slane %v2376_v14, %v6083_v53  ;;  %v2391_v62 = vrot.slane %v2377_v15, %v6083_v53  ;;  %3202 = vadd.xlane.f32.xlu0 %v3201_v26 }
 0x563   : > { %5198 = vpow2.f32 %v3159_v61  ;;  %v3139_v24 = vsub.f32 %v6663_v33, %v3113_v60 }
 0x564   : > { %v5193_v18 = vpop.eup %5192  ;;  %v2600_v8 = vcombine.low %v2368_v48, %v2375_v7  ;;  %v4732_v56 = vcombine.high %v2368_v48, %v2375_v7  ;;  %v2616_v31 = vcombine.low %v2384_v21, %v2391_v62  ;;  %v4733_v19 = vcombine.high %v2384_v21, %v2391_v62 }
 0x565   : > { %v6733_v2 = vpop.eup %5194  ;;  %v3165_v39 = vmul.f32 1.442695, %v3139_v24  ;;  %v3119_v36 = vpop.xlane.xlu0 %3118  ;;  %v3186_v32 = vsel %vm2676_vm2, %v5193_v18, 0.0  ;;  %v3242_v30 = vpack.c.bf16 %v5193_v18, %v6704_v6 }
 0x566   : > { %v2607_v38 = vrot.slane %v2600_v8, %v6079_v46  ;;  %v2615_v47 = vrot.slane %v4732_v56, %v6079_v46  ;;  %v2623_v33 = vrot.slane %v2616_v31, %v6079_v46  ;;  %v2631_v23 = vrot.slane %v4733_v19, %v6079_v46  ;;  %3187 = vadd.xlane.f32.xlu1 %v3186_v32 }
 0x567   : > { %v3141_v54 = vsub.f32 %v6667_v4, %v3119_v36  ;;  %4939 = vmatmul.mubr.msk.bf16.vlgmr.msra.gmra.mrb[24].mxu1 %vm2676_vm2, %v3242_v30  ;;  %v3204_v1 = vsel %vm2676_vm2, %v6733_v2, 0.0  ;;  %5200 = vpow2.f32 %v3165_v39 }
 0x568   : > { %v5197_v9 = vpop.eup %5196  ;;  %4949 = vmatpush3.bf16.msra.mxu1 %v6607_v49  ;;  %4950 = vmatprep.mubr.msk.bf16.mxu1 %vm5557_vm1, %v5556_v28  ;;  %v2632_v6 = vcombine.low %v2607_v38, %v2615_v47  ;;  %v2648_v55 = vcombine.low %v2623_v33, %v2631_v23  ;;  %v2633_v37 = vcombine.high %v2607_v38, %v2615_v47  ;;  %5202 = vpow2.f32 %v3167_v41 }
 0x569   : > { %v3169_v29 = vmul.f32 1.442695, %v3141_v54  ;;  %v3125_v17 = vpop.xlane.xlu0 %3124  ;;  %v3195_v10 = vsel %vm2676_vm2, %v5197_v9, 0.0  ;;  %4960 = vmatprep.subr.bf16.mxu1 %v5556_v28  ;;  %v2649_v4 = vcombine.high %v2623_v33, %v2631_v23 }
 0x56a   : > { %v3143_v49 = vsub.f32 %v6671_v5, %v3125_v17  ;;  %3205 = vadd.xlane.f32.xlu1 %v3204_v1  ;;  %3196 = vadd.xlane.f32.xlu0 %v3195_v10  ;;  %v2640_v63 = vrot.slane %v2632_v6, %v6083_v53  ;;  %v2656_v42 = vrot.slane %v2648_v55, %v6083_v53 }
 0x56b   : > { %5204 = vpow2.f32 %v3169_v29  ;;  %v2647_v52 = vrot.slane %v2633_v37, %v6083_v53  ;;  %v2663_v44 = vrot.slane %v2649_v4, %v6083_v53 }
 0x56c   : > { %v2664_v58 = vcombine.low %v2640_v63, %v2656_v42  ;;  %v2665_v50 = vcombine.high %v2640_v63, %v2656_v42  ;;  %v3173_v16 = vmul.f32 1.442695, %v3143_v49 }
 0x56d   : > { %v5199_v25 = vpop.eup %5198  ;;  %v3128_v34 = vpop.xlane.xlu0 %3127  ;;  %v2666_v0 = vcombine.low %v2647_v52, %v2663_v44  ;;  %v2667_v40 = vcombine.high %v2647_v52, %v2663_v44 }
 0x56e   : > { %v3144_v5 = vsub.f32 %v6675_v27, %v3128_v34  ;;  %v3198_v3 = vsel %vm2676_vm2, %v5199_v25, 0.0  ;;  %v3244_v14 = vpack.c.bf16 %v5199_v25, %v5197_v9  ;;  %v2672_v15 = vpack.c.bf16 %v2664_v58, %v2596_v20 }
 0x56f   : > { %3199 = vadd.xlane.f32.xlu1 %v3198_v3  ;;  %v2673_v59 = vpack.c.bf16 %v2665_v50, %v2597_v57  ;;  %v2674_v61 = vpack.c.bf16 %v2666_v0, %v2598_v45  ;;  %v2675_v27 = vpack.c.bf16 %v2667_v40, %v2599_v12  ;;  %5206 = vpow2.f32 %v3173_v16 }
 0x570   : > { %v3175_v60 = vmul.f32 1.442695, %v3144_v5  ;;  %4951 = vmatmul.mubr.msk.bf16.vlgmr.msra.gmra.mrb[28].mxu1 %vm2676_vm2, %v3244_v14  ;;  %4955 = vmatpush3.bf16.msra.mxu0 %v2672_v15  ;;  %v3245_v20 = vpack.c.bf16 %v6733_v2, %v6723_v13 }
 0x571   : > { %4961 = vmatpush3.bf16.msra.mxu1 %v2673_v59  ;;  %4966 = vmatprep.subr.bf16.mxu0 %v5556_v28  ;;  %v5201_v51 = vpop.eup %5200 }
 0x572   : > { %5208 = vpow2.f32 %v3175_v60  ;;  %4962 = vmatprep.mubr.msk.bf16.mxu1 %vm5557_vm1, %v5556_v28  ;;  %4972 = vmatprep.subr.bf16.mxu1 %v5556_v28  ;;  %v5203_v35 = vpop.eup %5202  ;;  %v3207_v45 = vsel %vm2676_vm2, %v5201_v51, 0.0 }
 0x573   : > { %4957 = vmatmul.mubr.msk.bf16.vlgmr.msra.gmra.mrb[28].mxu0 %vm2676_vm2, %v3245_v20  ;;  %v3246_v57 = vpack.c.bf16 %v5203_v35, %v5201_v51  ;;  %v3210_v8 = vsel %vm2676_vm2, %v5203_v35, 0.0 }
 0x574   : > { %4967 = vmatpush3.bf16.msra.mxu0 %v2674_v61  ;;  %4968 = vmatprep.mubr.msk.bf16.mxu0 %vm5557_vm1, %v5556_v28 }
 0x575   : > { %v5205_v22 = vpop.eup %5204 }
 0x576   : > { %v3213_v43 = vsel %vm2676_vm2, %v5205_v22, 0.0 }
 0x577   : > { %3214 = vadd.xlane.f32.xlu0 %v3213_v43 }
 0x578   : > { %4963 = vmatmul.mubr.msk.bf16.vlgmr.msra.gmra.mrb[32].mxu1 %vm2676_vm2, %v3246_v57 }
 0x579   : > { %4973 = vmatpush3.bf16.msra.mxu1 %v2675_v27  ;;  %4974 = vmatprep.mubr.msk.bf16.mxu1 %vm5557_vm1, %v5556_v28  ;;  %v5207_v12 = vpop.eup %5206 }
 0x57a   : > { %v3219_v48 = vsel %vm2676_vm2, %v5207_v12, 0.0 }
 0x57b   : > { %3208 = vadd.xlane.f32.xlu0 %v3207_v45 }
 0x57c   : > { %v5209_v13 = vpop.eup %5208 }
 0x57d   : > { %v3248_v26 = vpack.c.bf16 %v5209_v13, %v5207_v12  ;;  %v3222_v56 = vsel %vm2676_vm2, %v5209_v13, 0.0 }
 0x57f   : > { %3220 = vadd.xlane.f32.xlu0 %v3219_v48 }
 0x580   : > { %4975 = vmatmul.mubr.msk.bf16.vlgmr.msra.gmra.mrb[36].mxu1 %vm2676_vm2, %v3248_v26 }
 0x58c   : > { %v3122_v7 = vpop.xlane.xlu1 %3121 }
 0x58d   : > { %v3142_v21 = vsub.f32 %v6683_v11, %v3122_v7 }
 0x58f   : > { %v3171_v62 = vmul.f32 1.442695, %v3142_v21 }
 0x591   : > { %5210 = vpow2.f32 %v3171_v62 }
 0x59b   : > { %v5211_v24 = vpop.eup %5210 }
 0x59c   : > { %v3216_v18 = vsel %vm2676_vm2, %v5211_v24, 0.0  ;;  %v3247_v28 = vpack.c.bf16 %v5211_v24, %v5205_v22 }
 0x59d   : > { %3217 = vadd.xlane.f32.xlu1 %v3216_v18 }
 0x59e   : > { %4969 = vmatmul.mubr.msk.bf16.vlgmr.msra.gmra.mrb[32].mxu0 %vm2676_vm2, %v3247_v28 }
 0x5a1   : > { %3211 = vadd.xlane.f32.xlu1 %v3210_v8 }
 0x5a5   : > { %3223 = vadd.xlane.f32.xlu1 %v3222_v56 }
 0x5ca   : > { %v3179_v31 = vpop.xlane.xlu0 %3178 }
 0x5cb   : > { %5212 = vrcp.f32 %v3179_v31 }
 0x5cc   : > { %v3182_v19 = vpop.xlane.xlu1 %3181 }
 0x5ce   : > { %v3191_v2 = vpop.xlane.xlu0 %3190 }
 0x5cf   : > { %5214 = vrcp.f32 %v3191_v2 }
 0x5d0   : > { %v3194_v11 = vpop.xlane.xlu1 %3193  ;;  %5216 = vrcp.f32 %v3182_v19 }
 0x5d1   : > { %5218 = vrcp.f32 %v3194_v11 }
 0x5d5   : > { %v5213_v30 = vpop.eup %5212 }
 0x5d9   : > { %v5215_v38 = vpop.eup %5214 }
 0x5da   : > { %v5217_v33 = vpop.eup %5216 }
 0x5db   : > { %v5219_v1 = vpop.eup %5218 }
 0x5dc   : > { %v3185_v42 = vpop.xlane.xlu0 %3184 }
 0x5dd   : > { %5220 = vrcp.f32 %v3185_v42 }
 0x5e7   : > { %v5221_v14 = vpop.eup %5220 }
 0x5ef   : > { %v6791_v52 = vpop.xlane.xlu0 %3202 }
 0x5f3   : > { %v3188_v63 = vpop.xlane.xlu1 %3187 }
 0x5f7   : > { %v6793_v44 = vpop.xlane.xlu1 %3205  ;;  %v3197_v58 = vpop.xlane.xlu0 %3196 }
 0x5f8   : > { %5222 = vrcp.f32 %v3197_v58 }
 0x5f9   : > { %5224 = vrcp.f32 %v3188_v63 }
 0x5fc   : > { %v3200_v50 = vpop.xlane.xlu1 %3199 }
 0x5fd   : > { %5226 = vrcp.f32 %v3200_v50 }
 0x602   : > { %v5223_v59 = vpop.eup %5222 }
 0x603   : > { %v5225_v27 = vpop.eup %5224 }
 0x604   : > { %v6795_v25 = vpop.xlane.xlu0 %3214 }
 0x607   : > { %v5227_v35 = vpop.eup %5226 }
 0x608   : > { %v3209_v3 = vpop.xlane.xlu0 %3208 }
 0x609   : > { %5228 = vrcp.f32 %v3209_v3 }
 0x60c   : > { %v3221_v43 = vpop.xlane.xlu0 %3220 }
 0x613   : > { %v3286_v41 = vpop.f32.mrb[20].mxu0 }
 0x614   : > { %v4934_v39 = vpop.f32.mrb[21].mxu0  ;;  %v3601_v23 = vmul.f32 %v5213_v30, %v3286_v41 }
 0x615   : > { %v3289_v36 = vpop.f32.mrb[22].mxu0 }
 0x616   : > { %v4935_v32 = vpop.f32.mrb[23].mxu0  ;;  %v3602_v55 = vmul.f32 %v5217_v33, %v3289_v36 }
 0x61b   : > { %v3374_v47 = vpop.f32.mrb[24].mxu0 }
 0x61c   : > { %v3605_v54 = vmul.f32 %v5215_v38, %v3374_v47  ;;  %v4946_v9 = vpop.f32.mrb[25].mxu0 }
 0x61d   : > { %v3377_v6 = vpop.f32.mrb[26].mxu0 }
 0x61e   : > { %v3617_v37 = vcombine.low %v3601_v23, %v3605_v54  ;;  %v3618_v29 = vcombine.high %v3601_v23, %v3605_v54  ;;  %v3606_v17 = vmul.f32 %v5219_v1, %v3377_v6  ;;  %v4947_v10 = vpop.f32.mrb[27].mxu0 }
 0x61f   : > { %v5229_v10 = vpop.eup %5228 }
 0x620   : > { %v3685_v4 = vcombine.low %v3602_v55, %v3606_v17  ;;  %v3686_v49 = vcombine.high %v3602_v55, %v3606_v17  ;;  %v3625_v48 = vrot.slane %v3617_v37, %v6079_v46  ;;  %v3632_v7 = vrot.slane %v3618_v29, %v6079_v46 }
 0x622   : > { %v3693_v31 = vrot.slane %v3685_v4, %v6079_v46  ;;  %v3700_v32 = vrot.slane %v3686_v49, %v6079_v46 }
 0x62a   : > { %v6797_v0 = vpop.xlane.xlu1 %3217 }
 0x62e   : > { %v3212_v15 = vpop.xlane.xlu1 %3211 }
 0x62f   : > { %5230 = vrcp.f32 %v3212_v15 }
 0x630   : > { %5232 = vrcp.f32 %v3221_v43 }
 0x632   : > { %v3224_v62 = vpop.xlane.xlu1 %3223 }
 0x633   : > { %5234 = vrcp.f32 %v3224_v62 }
 0x634   : > { %5236 = vrcp.f32 %v6791_v52 }
 0x635   : > { %5238 = vrcp.f32 %v6795_v25 }
 0x636   : > { %5240 = vrcp.f32 %v6793_v44 }
 0x637   : > { %5242 = vrcp.f32 %v6797_v0 }
 0x639   : > { %v5231_v50 = vpop.eup %5230 }
 0x63a   : > { %v3330_v16 = vpop.f32.mrb[24].mxu1 }
 0x63b   : > { %v4940_v34 = vpop.f32.mrb[25].mxu1  ;;  %v3603_v60 = vmul.f32 %v5221_v14, %v3330_v16 }
 0x63c   : > { %v3333_v40 = vpop.f32.mrb[26].mxu1 }
 0x63d   : > { %v4941_v5 = vpop.f32.mrb[27].mxu1  ;;  %v3604_v57 = vmul.f32 %v5225_v27, %v3333_v40 }
 0x643   : > { %v3418_v61 = vpop.f32.mrb[28].mxu1 }
 0x644   : > { %v3607_v20 = vmul.f32 %v5223_v59, %v3418_v61  ;;  %v4952_v51 = vpop.f32.mrb[29].mxu1 }
 0x645   : > { %v3421_v22 = vpop.f32.mrb[30].mxu1 }
 0x646   : > { %v3633_v45 = vcombine.low %v3603_v60, %v3607_v20  ;;  %v3634_v12 = vcombine.high %v3603_v60, %v3607_v20  ;;  %v3608_v13 = vmul.f32 %v5227_v35, %v3421_v22  ;;  %v4953_v26 = vpop.f32.mrb[31].mxu1  ;;  %v6801_v21 = vpop.f32.mrb[28].mxu0 }
 0x647   : > { %v4958_v56 = vpop.f32.mrb[29].mxu0 }
 0x648   : > { %v3641_v24 = vrot.slane %v3633_v45, %v6079_v46  ;;  %v3648_v18 = vrot.slane %v3634_v12, %v6079_v46  ;;  %v3701_v28 = vcombine.low %v3604_v57, %v3608_v13  ;;  %v3702_v8 = vcombine.high %v3604_v57, %v3608_v13  ;;  %v6806_v19 = vpop.f32.mrb[30].mxu0  ;;  %v5233_v57 = vpop.eup %5232 }
 0x649   : > { %v4959_v36 = vpop.f32.mrb[31].mxu0 }
 0x64a   : > { %v3649_v2 = vcombine.low %v3625_v48, %v3641_v24  ;;  %v3650_v11 = vcombine.high %v3625_v48, %v3641_v24  ;;  %v3665_v41 = vcombine.low %v3632_v7, %v3648_v18  ;;  %v3666_v39 = vcombine.high %v3632_v7, %v3648_v18 }
 0x64b   : > { %v3709_v30 = vrot.slane %v3701_v28, %v6079_v46  ;;  %v3716_v38 = vrot.slane %v3702_v8, %v6079_v46  ;;  %v3506_v47 = vpop.f32.mrb[32].mxu1  ;;  %v5235_v8 = vpop.eup %5234 }
 0x64c   : > { %v3657_v33 = vrot.slane %v3649_v2, %v6083_v53  ;;  %v3664_v23 = vrot.slane %v3650_v11, %v6083_v53  ;;  %v3673_v54 = vrot.slane %v3665_v41, %v6083_v53  ;;  %v3680_v9 = vrot.slane %v3666_v39, %v6083_v53  ;;  %v4964_v1 = vpop.f32.mrb[33].mxu1 }
 0x64d   : > { %v3717_v6 = vcombine.low %v3693_v31, %v3709_v30  ;;  %v3718_v55 = vcombine.high %v3693_v31, %v3709_v30  ;;  %v3733_v37 = vcombine.low %v3700_v32, %v3716_v38  ;;  %v3734_v29 = vcombine.high %v3700_v32, %v3716_v38  ;;  %v3509_v17 = vpop.f32.mrb[34].mxu1 }
 0x64e   : > { %v3889_v4 = vcombine.low %v3657_v33, %v3664_v23  ;;  %v4752_v49 = vcombine.high %v3657_v33, %v3664_v23  ;;  %v3905_v63 = vcombine.low %v3673_v54, %v3680_v9  ;;  %v4753_v42 = vcombine.high %v3673_v54, %v3680_v9  ;;  %v4965_v58 = vpop.f32.mrb[35].mxu1 }
 0x64f   : > { %v3725_v16 = vrot.slane %v3717_v6, %v6083_v53  ;;  %v3732_v34 = vrot.slane %v3718_v55, %v6083_v53  ;;  %v3741_v40 = vrot.slane %v3733_v37, %v6083_v53  ;;  %v3748_v5 = vrot.slane %v3734_v29, %v6083_v53 }
 0x650   : > { %v6819_v3 = vmul.f32 %v5229_v10, %v3506_v47  ;;  %v6821_v14 = vmul.f32 %v5231_v50, %v3509_v17  ;;  %v3896_v15 = vrot.slane %v3889_v4, %v6079_v46  ;;  %v3904_v59 = vrot.slane %v4752_v49, %v6079_v46 }
 0x651   : > { %v3957_v61 = vcombine.low %v3725_v16, %v3732_v34  ;;  %v4754_v27 = vcombine.high %v3725_v16, %v3732_v34  ;;  %v3973_v60 = vcombine.low %v3741_v40, %v3748_v5  ;;  %v4755_v20 = vcombine.high %v3741_v40, %v3748_v5  ;;  %v5164_v16 = vld [vmem:[#allocation8] sm:$0xff]   ;;  %v5237_v40 = vpop.eup %5236 }
 0x652   : > { %v3912_v51 = vrot.slane %v3905_v63, %v6079_v46  ;;  %v3920_v35 = vrot.slane %v4753_v42, %v6079_v46  ;;  %v3922_v22 = vcombine.high %v3896_v15, %v3904_v59  ;;  %v3921_v43 = vcombine.low %v3896_v15, %v3904_v59  ;;  %4978 = vmatprep.subr.bf16.mxu0 %v5164_v16  ;;  %v5239_v5 = vpop.eup %5238 }
 0x653   : > { %v3594_v45 = vpop.f32.mrb[36].mxu1  ;;  %v3964_v12 = vrot.slane %v3957_v61, %v6079_v46  ;;  %v3972_v13 = vrot.slane %v4754_v27, %v6079_v46  ;;  %v3980_v26 = vrot.slane %v3973_v60, %v6079_v46  ;;  %v3988_v48 = vrot.slane %v4755_v20, %v6079_v46  ;;  %4979 = vmatpush3.bf16.msra.mxu0 %v5164_v16 }
 0x654   : > { %v6831_v7 = vmul.f32 %v5233_v57, %v3594_v45  ;;  %v4976_v62 = vpop.f32.mrb[37].mxu1  ;;  %v3936_v24 = vrot.slane %v3922_v22, %v6083_v53  ;;  %v3938_v18 = vcombine.high %v3912_v51, %v3920_v35  ;;  %v6835_v28 = vrot.slane %v3921_v43, %v6083_v53 }
 0x655   : > { %v3597_v56 = vpop.f32.mrb[38].mxu1  ;;  %v3990_v31 = vcombine.high %v3964_v12, %v3972_v13  ;;  %v4006_v2 = vcombine.high %v3980_v26, %v3988_v48  ;;  %v3937_v11 = vcombine.low %v3912_v51, %v3920_v35  ;;  %v3989_v41 = vcombine.low %v3964_v12, %v3972_v13 }
 0x656   : > { %v3769_v39 = vcombine.low %v6819_v3, %v6831_v7  ;;  %v3770_v36 = vcombine.high %v6819_v3, %v6831_v7  ;;  %v3616_v32 = vmul.f32 %v5235_v8, %v3597_v56  ;;  %v4977_v30 = vpop.f32.mrb[39].mxu1  ;;  %v3952_v38 = vrot.slane %v3938_v18, %v6083_v53 }
 0x657   : > { %v4004_v47 = vrot.slane %v3990_v31, %v6083_v53  ;;  %v4020_v33 = vrot.slane %v4006_v2, %v6083_v53  ;;  %v6845_v23 = vrot.slane %v3937_v11, %v6083_v53  ;;  %v6850_v1 = vrot.slane %v3989_v41, %v6083_v53 }
 0x658   : > { %v3837_v54 = vcombine.low %v6821_v14, %v3616_v32  ;;  %v3838_v9 = vcombine.high %v6821_v14, %v3616_v32  ;;  %v3955_v6 = vcombine.low %v3936_v24, %v3952_v38  ;;  %v4005_v29 = vcombine.low %v3980_v26, %v3988_v48  ;;  %v5241_v14 = vpop.eup %5240 }
 0x659   : > { %v4023_v55 = vcombine.low %v4004_v47, %v4020_v33  ;;  %v3954_v37 = vcombine.high %v6835_v28, %v6845_v23  ;;  %v3953_v17 = vcombine.low %v6835_v28, %v6845_v23  ;;  %v3956_v10 = vcombine.high %v3936_v24, %v3952_v38  ;;  %v5243_v27 = vpop.eup %5242 }
 0x65a   : > { %v6857_v49 = vrot.slane %v4005_v29, %v6083_v53  ;;  %v4024_v63 = vcombine.high %v4004_v47, %v4020_v33  ;;  %v3609_v15 = vmul.f32 %v5237_v40, %v6801_v21  ;;  %v3610_v20 = vmul.f32 %v5241_v14, %v6806_v19  ;;  %v5165_v40 = vld [vmem:[#allocation8 + $0x8] sm:$0xff]  }
 0x65b   : > { %v5127_v4 = vpack.i.bf16 %v4023_v55, %v3955_v6  ;;  %v3777_v44 = vrot.slane %v3769_v39, %v6079_v46  ;;  %v3784_v0 = vrot.slane %v3770_v36, %v6079_v46  ;;  %v3845_v19 = vrot.slane %v3837_v54, %v6079_v46  ;;  %4980 = vmatprep.subr.bf16.mxu0 %v5165_v40 }
 0x65c   : > { %v4021_v42 = vcombine.low %v6850_v1, %v6857_v49  ;;  %v4022_v58 = vcombine.high %v6850_v1, %v6857_v49  ;;  %v5132_v50 = vpack.i.bf16 %v4024_v63, %v3956_v10  ;;  %v3852_v48 = vrot.slane %v3838_v9, %v6079_v46  ;;  %4981 = vmatpush3.bf16.msra.mxu0 %v5165_v40 }
 0x65d   : > { %5128 = vrot.lane.b32.xlu1 %v5127_v4, %s5560_s0 }
 0x65e   : > { %v5122_v34 = vpack.i.bf16 %v4022_v58, %v3954_v37 }
 0x660   : > { %5123 = vrot.lane.b32.xlu0 %v5122_v34, %s5561_s7 }
 0x664   : > { %5133 = vrot.lane.b32.xlu0 %v5132_v50, %s5562_s8 }
 0x671   : > { %v3550_v3 = vpop.f32.mrb[32].mxu0 }
 0x672   : > { %v3613_v59 = vmul.f32 %v5239_v5, %v3550_v3  ;;  %v4970_v61 = vpop.f32.mrb[33].mxu0 }
 0x673   : > { %v3553_v60 = vpop.f32.mrb[34].mxu0 }
 0x674   : > { %v3753_v51 = vcombine.low %v3609_v15, %v3613_v59  ;;  %v3754_v52 = vcombine.high %v3609_v15, %v3613_v59  ;;  %v3614_v35 = vmul.f32 %v5243_v27, %v3553_v60  ;;  %v4971_v25 = vpop.f32.mrb[35].mxu0 }
 0x676   : > { %v3761_v22 = vrot.slane %v3753_v51, %v6079_v46  ;;  %v3768_v43 = vrot.slane %v3754_v52, %v6079_v46  ;;  %v3821_v57 = vcombine.low %v3610_v20, %v3614_v35  ;;  %v3822_v21 = vcombine.high %v3610_v20, %v3614_v35 }
 0x678   : > { %v3785_v45 = vcombine.low %v3761_v22, %v3777_v44  ;;  %v3786_v12 = vcombine.high %v3761_v22, %v3777_v44  ;;  %v3801_v13 = vcombine.low %v3768_v43, %v3784_v0  ;;  %v3802_v26 = vcombine.high %v3768_v43, %v3784_v0  ;;  %v5166_v22 = vld [vmem:[#allocation8 + $0x10] sm:$0xff]  }
 0x679   : > { %v3829_v7 = vrot.slane %v3821_v57, %v6079_v46  ;;  %v3836_v62 = vrot.slane %v3822_v21, %v6079_v46  ;;  %4982 = vmatprep.subr.bf16.mxu0 %v5166_v22 }
 0x67a   : > { %v3793_v24 = vrot.slane %v3785_v45, %v6083_v53  ;;  %v3800_v18 = vrot.slane %v3786_v12, %v6083_v53  ;;  %v3809_v8 = vrot.slane %v3801_v13, %v6083_v53  ;;  %v3816_v56 = vrot.slane %v3802_v26, %v6083_v53  ;;  %4983 = vmatpush3.bf16.msra.mxu0 %v5166_v22 }
 0x67b   : > { %v3853_v31 = vcombine.low %v3829_v7, %v3845_v19  ;;  %v3854_v2 = vcombine.high %v3829_v7, %v3845_v19  ;;  %v3869_v11 = vcombine.low %v3836_v62, %v3852_v48  ;;  %v3870_v41 = vcombine.high %v3836_v62, %v3852_v48 }
 0x67c   : > { %v4025_v39 = vcombine.low %v3793_v24, %v3800_v18  ;;  %v4756_v36 = vcombine.high %v3793_v24, %v3800_v18  ;;  %v4041_v32 = vcombine.low %v3809_v8, %v3816_v56  ;;  %v4757_v30 = vcombine.high %v3809_v8, %v3816_v56  ;;  %v5167_v24 = vld [vmem:[#allocation8 + $0x18] sm:$0xff]  }
 0x67d   : > { %v3861_v38 = vrot.slane %v3853_v31, %v6083_v53  ;;  %v3868_v47 = vrot.slane %v3854_v2, %v6083_v53  ;;  %v3877_v33 = vrot.slane %v3869_v11, %v6083_v53  ;;  %v3884_v54 = vrot.slane %v3870_v41, %v6083_v53  ;;  %4984 = vmatprep.subr.bf16.mxu0 %v5167_v24 }
 0x67e   : > { %v4032_v9 = vrot.slane %v4025_v39, %v6079_v46  ;;  %v4040_v6 = vrot.slane %v4756_v36, %v6079_v46  ;;  %v4048_v55 = vrot.slane %v4041_v32, %v6079_v46  ;;  %v4056_v37 = vrot.slane %v4757_v30, %v6079_v46  ;;  %4985 = vmatpush3.bf16.msra.mxu0 %v5167_v24 }
 0x67f   : > { %v4093_v29 = vcombine.low %v3861_v38, %v3868_v47  ;;  %v4758_v10 = vcombine.high %v3861_v38, %v3868_v47  ;;  %v4109_v4 = vcombine.low %v3877_v33, %v3884_v54  ;;  %v4759_v63 = vcombine.high %v3877_v33, %v3884_v54 }
 0x680   : > { %v4057_v58 = vcombine.low %v4032_v9, %v4040_v6  ;;  %v4073_v50 = vcombine.low %v4048_v55, %v4056_v37  ;;  %v4058_v16 = vcombine.high %v4032_v9, %v4040_v6  ;;  %v4074_v34 = vcombine.high %v4048_v55, %v4056_v37 }
 0x681   : > { %v4100_v5 = vrot.slane %v4093_v29, %v6079_v46  ;;  %v4108_v3 = vrot.slane %v4758_v10, %v6079_v46  ;;  %v4116_v14 = vrot.slane %v4109_v4, %v6079_v46  ;;  %v4124_v15 = vrot.slane %v4759_v63, %v6079_v46 }
 0x682   : > { %v6897_v59 = vrot.slane %v4057_v58, %v6083_v53  ;;  %v4081_v61 = vrot.slane %v4073_v50, %v6083_v53  ;;  %v4072_v27 = vrot.slane %v4058_v16, %v6083_v53  ;;  %v4088_v60 = vrot.slane %v4074_v34, %v6083_v53  ;;  %v4760_v16 = vld [vmem:[%s7089_s19] ss:$0 sm:$0xff]  ;;  %s7092_s19 = sld [smem:[#allocation30_spill]] }
 0x683   : > { %v4125_v20 = vcombine.low %v4100_v5, %v4108_v3  ;;  %v4141_v51 = vcombine.low %v4116_v14, %v4124_v15  ;;  %v4126_v52 = vcombine.high %v4100_v5, %v4108_v3  ;;  %v4142_v35 = vcombine.high %v4116_v14, %v4124_v15 }
 0x684   : > { %v4090_v25 = vcombine.high %v6897_v59, %v4081_v61  ;;  %v4089_v44 = vcombine.low %v6897_v59, %v4081_v61  ;;  %v4091_v46 = vcombine.low %v4072_v27, %v4088_v60  ;;  %v4092_v0 = vcombine.high %v4072_v27, %v4088_v60  ;;  %v5252_v59 = vld [vmem:[%s5908_s20] sm:$0xff]  ;;  %v5253_v60 = vld [vmem:[%s5908_s20 + $0x10] sm:$0xff] }
 0x685   : > { %v4133_v43 = vrot.slane %v4125_v20, %v6083_v53  ;;  %v4149_v57 = vrot.slane %v4141_v51, %v6083_v53  ;;  %v4140_v21 = vrot.slane %v4126_v52, %v6083_v53  ;;  %v4156_v45 = vrot.slane %v4142_v35, %v6083_v53  ;;  %v5254_v52 = vld [vmem:[%s5908_s20 + $0x8] sm:$0xff] }
 0x687   : > { %v4157_v12 = vcombine.low %v4133_v43, %v4149_v57  ;;  %v4158_v13 = vcombine.high %v4133_v43, %v4149_v57  ;;  %v4159_v26 = vcombine.low %v4140_v21, %v4156_v45  ;;  %v4160_v19 = vcombine.high %v4140_v21, %v4156_v45 }
 0x688   : > { %s6991_s27 = scalar_lea.hbm %s7092_s19, %s4783_s28 }
 0x689   : > { %v5137_v48 = vpack.i.bf16 %v4158_v13, %v4090_v25  ;;  %v5142_v7 = vpack.i.bf16 %v4159_v26, %v4091_v46  ;;  %v5147_v62 = vpack.i.bf16 %v4160_v19, %v4092_v0  ;;  %v5255_v46 = vld [vmem:[%s5908_s20 + $0x18] sm:$0xff]  ;;  %s4506_s20 = scalar_lea.sflag [#allocation4], %s5902_s14 }
 0x68b   : > { %5138 = vrot.lane.b32.xlu1 %v5137_v48, %s5561_s7  ;;  %s537_s7 = scalar_lea.vmem [#allocation14], %s4677_s26 }
 0x68f   : > { %5143 = vrot.lane.b32.xlu1 %v5142_v7, %s5560_s0  ;;  %s7091_s0 = sld [smem:[#allocation29_spill]] }
 0x693   : > { %5148 = vrot.lane.b32.xlu1 %v5147_v62, %s5562_s8  ;;  %s4519_s8 = sshll.u32 %s537_s7, 4  ;;  %s6983_s8 = int_to_ptr.vmem [resolvable:$true] %s4519_s8 }
 0x694   : > { %s5456_s17 = scalar_lea.vmem %s6983_s8, 512  ;;  %p5463_p5 = scmp.lt.s32.totalorder %s6983_s8, %s5461_s10 }
 0x695   : > { %p5457_p7 = scmp.ne.s32.totalorder %s6983_s8, %s5456_s17  ;;  %p5464_p9 = scmp.lt.s32.totalorder %s5462_s18, %s5456_s17 }
 0x697   : > { %p5458_p6 = pnand %p5457_p7, %p7093_p2  ;;  %p5465_p4 = por %p5464_p9, %p5463_p5 }
 0x699   : > { %p5459_p10 = pneg %p5458_p6 }
 0x69b   : > { %p5466_p8 = pnand %p5465_p4, %p5459_p10 }
 0x6cf   : > { %v5129_v18 = vpop.permute.xlu1 %5128 }
 0x6d0   : > { %v5131_v31 = vunpack.i.h.bf16 %v5129_v18  ;;  %v5130_v2 = vunpack.i.l.bf16 %v5129_v18 }
 0x6d2   : > { %v5124_v53 = vpop.permute.xlu0 %5123 }
 0x6d3   : > { %v5126_v8 = vunpack.i.h.bf16 %v5124_v53  ;;  %v5125_v56 = vunpack.i.l.bf16 %v5124_v53 }
 0x6d5   : > { %v4210_v11 = vsel %vm2676_vm2, %v4021_v42, %v5126_v8  ;;  %v4209_v41 = vsel %vm2676_vm2, %v3953_v17, %v5125_v56 }
 0x6d6   : > { %v5134_v39 = vpop.permute.xlu0 %5133  ;;  %v4214_v30 = vsel %vm4213_vm3, %v4209_v41, %v5130_v2  ;;  %v4215_v38 = vsel %vm4213_vm3, %v4210_v11, %v5131_v31 }
 0x6d7   : > { %v5136_v36 = vunpack.i.h.bf16 %v5134_v39  ;;  %v5135_v32 = vunpack.i.l.bf16 %v5134_v39 }
 0x6d9   : > { %v4219_v47 = vsel %vm4218_vm4, %v4214_v30, %v5135_v32  ;;  %v4220_v1 = vsel %vm4218_vm4, %v4215_v38, %v5136_v36  ;;  %v5168_v36 = vld [vmem:[%s7090_s2] sm:$0xff]   ;;  %v5169_v32 = vld [vmem:[%s7090_s2 + $0x8] sm:$0xff]   ;;  %v5170_v30 = vld [vmem:[%s7090_s2 + $0x10] sm:$0xff]  }
 0x6da   : > { %v4223_v49 = vpack.c.bf16 %v4220_v1, %v4219_v47  ;;  %4990 = vmatprep.subr.bf16.mxu1 %v5168_v36  ;;  %v5171_v38 = vld [vmem:[%s7090_s2 + $0x18] sm:$0xff]  }
 0x6db   : > { %4991 = vmatpush3.bf16.msra.mxu1 %v5168_v36 }
 0x6dc   : > { %4986 = vmatprep.mubr.msk.bf16.mxu0 %vm550_vm0, %v4223_v49  ;;  %4992 = vmatprep.subr.bf16.mxu1 %v5169_v32 }
 0x6df   : > { %4993 = vmatpush3.bf16.msra.mxu1 %v5169_v32 }
 0x6e0   : > { %4994 = vmatprep.subr.bf16.mxu1 %v5170_v30 }
 0x6e3   : > { %4995 = vmatpush3.bf16.msra.mxu1 %v5170_v30 }
 0x6e4   : > { %4996 = vmatprep.subr.bf16.mxu1 %v5171_v38 }
 0x6e7   : > { %4997 = vmatpush3.bf16.msra.mxu1 %v5171_v38 }
 0x6fd   : > { %v5139_v42 = vpop.permute.xlu1 %5138 }
 0x6fe   : > { %v5141_v23 = vunpack.i.h.bf16 %v5139_v42  ;;  %v5140_v17 = vunpack.i.l.bf16 %v5139_v42 }
 0x700   : > { %v4212_v6 = vsel %vm2676_vm2, %v4157_v12, %v5141_v23  ;;  %v4211_v55 = vsel %vm2676_vm2, %v4089_v44, %v5140_v17 }
 0x701   : > { %v5144_v28 = vpop.permute.xlu1 %5143 }
 0x702   : > { %v5146_v33 = vunpack.i.h.bf16 %v5144_v28  ;;  %v5145_v54 = vunpack.i.l.bf16 %v5144_v28 }
 0x704   : > { %v4216_v10 = vsel %vm4213_vm3, %v4211_v55, %v5145_v54  ;;  %v4217_v4 = vsel %vm4213_vm3, %v4212_v6, %v5146_v33 }
 0x705   : > { %v5149_v9 = vpop.permute.xlu1 %5148 }
 0x706   : > { %v5151_v37 = vunpack.i.h.bf16 %v5149_v9  ;;  %v5150_v29 = vunpack.i.l.bf16 %v5149_v9 }
 0x708   : > { %v4221_v63 = vsel %vm4218_vm4, %v4216_v10, %v5150_v29  ;;  %v4222_v58 = vsel %vm4218_vm4, %v4217_v4, %v5151_v37  ;;  %v4767_v29 = vld [vmem:[#allocation11] ss:$0 sm:$0xff] }
 0x709   : > { %v4224_v50 = vpack.c.bf16 %v4222_v58, %v4221_v63 }
 0x70b   : > { %4987 = vmatmul.mubr.msk.bf16.vlgmr.msra.gmra.mrb[36].mxu0 %vm550_vm0, %v4224_v50 }
 0x7de   : > { %v4988_v34 = vpop.f32.mrb[36].mxu0 }
 0x7df   : > { %v4304_v40 = vpop.f32.mrb[37].mxu0  ;;  %v4313_v5 = vadd.f32 %v4988_v34, %v4760_v16 }
 0x7e0   : > { %v4305_v3 = vadd.f32 %v4760_v16, %v4304_v40  ;;  %v4989_v14 = vpop.f32.mrb[38].mxu0 }
 0x7e1   : > { %v4307_v15 = vpop.f32.mrb[39].mxu0  ;;  %v6938_v20 = vadd.f32 %v5253_v60, %v4313_v5  ;;  %v4316_v51 = vadd.f32 %v4989_v14, %v4760_v16 }
 0x7e2   : > { %v6935_v61 = vadd.f32 %v5252_v59, %v4305_v3  ;;  %v4308_v27 = vadd.f32 %v4760_v16, %v4307_v15  ;;  %v4768_v16 = vld [vmem:[#allocation13] ss:$0 sm:$0xff] }
 0x7e3   : > { %v6948_v0 = vadd.f32 %v5255_v46, %v4316_v51  ;;  %v4331_v22 = vsel %vm550_vm0, %v6938_v20, 0.0 }
 0x7e4   : > { %v6941_v35 = vadd.f32 %v5254_v52, %v4308_v27  ;;  %v4325_v25 = vsel %vm550_vm0, %v6935_v61, 0.0 }
 0x7e5   : > { %4326 = vadd.xlane.f32.xlu0 %v4325_v25  ;;  %v4334_v43 = vsel %vm550_vm0, %v6948_v0, 0.0 }
 0x7e6   : > { %v4328_v44 = vsel %vm550_vm0, %v6941_v35, 0.0 }
 0x7e7   : > { %4329 = vadd.xlane.f32.xlu1 %v4328_v44  ;;  %v4769_v44 = vld [vmem:[%s7091_s0] ss:$0 sm:$0xff] }
 0x7e9   : > { %4332 = vadd.xlane.f32.xlu0 %v4331_v22 }
 0x7ed   : > { %4335 = vadd.xlane.f32.xlu0 %v4334_v43 }
 0x872   : > { %v4327_v57 = vpop.xlane.xlu0 %4326 }
 0x873   : > { %v4337_v21 = vmul.f32 0.015625, %v4327_v57 }
 0x874   : > { %v4330_v45 = vpop.xlane.xlu1 %4329 }
 0x875   : > { %v4341_v12 = vsub.f32 %v6935_v61, %v4337_v21  ;;  %v4338_v13 = vmul.f32 0.015625, %v4330_v45 }
 0x876   : > { %v4333_v26 = vpop.xlane.xlu0 %4332 }
 0x877   : > { %v4342_v19 = vsub.f32 %v6941_v35, %v4338_v13  ;;  %v4339_v48 = vmul.f32 0.015625, %v4333_v26  ;;  %v4345_v7 = vmul.f32 %v4341_v12, %v4341_v12 }
 0x879   : > { %v4343_v62 = vsub.f32 %v6938_v20, %v4339_v48  ;;  %v4349_v24 = vsel %vm550_vm0, %v4345_v7, 0.0  ;;  %v4346_v18 = vmul.f32 %v4342_v19, %v4342_v19 }
 0x87a   : > { %4350 = vadd.xlane.f32.xlu0 %v4349_v24  ;;  %v4336_v53 = vpop.xlane.xlu0 %4335 }
 0x87b   : > { %v4340_v8 = vmul.f32 0.015625, %v4336_v53  ;;  %v4352_v56 = vsel %vm550_vm0, %v4346_v18, 0.0  ;;  %v4347_v31 = vmul.f32 %v4343_v62, %v4343_v62 }
 0x87c   : > { %4353 = vadd.xlane.f32.xlu1 %v4352_v56 }
 0x87d   : > { %v4344_v2 = vsub.f32 %v6948_v0, %v4340_v8  ;;  %v4355_v11 = vsel %vm550_vm0, %v4347_v31, 0.0 }
 0x87e   : > { %4356 = vadd.xlane.f32.xlu0 %v4355_v11 }
 0x87f   : > { %v4348_v41 = vmul.f32 %v4344_v2, %v4344_v2 }
 0x881   : > { %v4358_v39 = vsel %vm550_vm0, %v4348_v41, 0.0 }
 0x882   : > { %4359 = vadd.xlane.f32.xlu1 %v4358_v39 }
 0x907   : > { %v4351_v47 = vpop.xlane.xlu0 %4350 }
 0x908   : > { %v4361_v1 = vmul.f32 0.015625, %v4351_v47 }
 0x909   : > { %v4354_v49 = vpop.xlane.xlu1 %4353 }
 0x90a   : > { %v4365_v42 = vadd.f32 1e-05, %v4361_v1  ;;  %v4362_v28 = vmul.f32 0.015625, %v4354_v49 }
 0x90b   : > { %v4357_v23 = vpop.xlane.xlu0 %4356 }
 0x90c   : > { %5244 = vrsqrt.f32 %v4365_v42  ;;  %v4366_v17 = vadd.f32 1e-05, %v4362_v28  ;;  %v4363_v33 = vmul.f32 0.015625, %v4357_v23 }
 0x90e   : > { %5246 = vrsqrt.f32 %v4366_v17  ;;  %v4367_v54 = vadd.f32 1e-05, %v4363_v33 }
 0x90f   : > { %v4360_v9 = vpop.xlane.xlu1 %4359 }
 0x910   : > { %5248 = vrsqrt.f32 %v4367_v54  ;;  %v4364_v6 = vmul.f32 0.015625, %v4360_v9 }
 0x912   : > { %v4368_v55 = vadd.f32 1e-05, %v4364_v6 }
 0x914   : > { %5250 = vrsqrt.f32 %v4368_v55 }
 0x916   : > { %v5245_v37 = vpop.eup %5244 }
 0x917   : > { %v4373_v10 = vmul.f32 %v5245_v37, %v4341_v12 }
 0x918   : > { %v5247_v4 = vpop.eup %5246 }
 0x919   : > { %v4374_v63 = vmul.f32 %v5247_v4, %v4342_v19  ;;  %v4383_v58 = vmul.f32 %v4767_v29, %v4373_v10 }
 0x91a   : > { %v5249_v50 = vpop.eup %5248 }
 0x91b   : > { %v4375_v34 = vmul.f32 %v5249_v50, %v4343_v62  ;;  %v4384_v40 = vmul.f32 %v4767_v29, %v4374_v63  ;;  %v4393_v5 = vadd.f32 %v4768_v16, %v4383_v58 }
 0x91d   : > { %v4394_v3 = vadd.f32 %v4768_v16, %v4384_v40  ;;  %v4385_v15 = vmul.f32 %v4767_v29, %v4375_v34 }
 0x91e   : > { %v5251_v14 = vpop.eup %5250 }
 0x91f   : > { %v4376_v59 = vmul.f32 %v5251_v14, %v4344_v2  ;;  %v4397_v27 = vpack.c.bf16 %v4394_v3, %v4393_v5  ;;  %v4395_v51 = vadd.f32 %v4768_v16, %v4385_v15 }
 0x921   : > { %v4386_v60 = vmul.f32 %v4767_v29, %v4376_v59  ;;  %4998 = vmatprep.mubr.msk.bf16.mxu1 %vm550_vm0, %v4397_v27 }
 0x923   : > { %v4396_v52 = vadd.f32 %v4768_v16, %v4386_v60 }
 0x925   : > { %v4398_v25 = vpack.c.bf16 %v4396_v52, %v4395_v51 }
 0x927   : > { %4999 = vmatmul.mubr.msk.bf16.vlgmr.msra.gmra.mrb[40].mxu1 %vm550_vm0, %v4398_v25 }
 0x9fa   : > { %v5000_v46 = vpop.f32.mrb[40].mxu1 }
 0x9fb   : > { %v4487_v22 = vadd.f32 %v5000_v46, %v4769_v44  ;;  %v4478_v43 = vpop.f32.mrb[41].mxu1 }
 0x9fc   : > { %v4479_v57 = vadd.f32 %v4769_v44, %v4478_v43  ;;  %v5001_v21 = vpop.f32.mrb[42].mxu1 }
 0x9fd   : > { %v4495_v45 = vmax.f32 %v4487_v22, 0.0  ;;  %v4490_v12 = vadd.f32 %v5001_v21, %v4769_v44  ;;  %v4481_v13 = vpop.f32.mrb[43].mxu1 }
 0x9fe   : > { %v4493_v26 = vmax.f32 %v4479_v57, 0.0  ;;  %v4482_v19 = vadd.f32 %v4769_v44, %v4481_v13 }
 0x9ff   : > { %v4499_v48 = vadd.f32 %v4495_v45, %v6938_v20  ;;  %v4496_v7 = vmax.f32 %v4490_v12, 0.0 }
 0xa00   : > { %v4497_v62 = vadd.f32 %v4493_v26, %v6935_v61  ;;  %v4494_v24 = vmax.f32 %v4482_v19, 0.0 }
 0xa01   : > { %4503 = vst.msk [vmem:[%s537_s7 + $0x10] sm:$0xff] %vm550_vm0, %v4499_v48  ;;  %v4500_v18 = vadd.f32 %v4496_v7, %v6948_v0 }
 0xa02   : > { %4501 = vst.msk [vmem:[%s537_s7] sm:$0xff] %vm550_vm0, %v4497_v62  ;;  %v4498_v20 = vadd.f32 %v4494_v24, %v6941_v35 }
 0xa03   : > { %4504 = vst.msk [vmem:[%s537_s7 + $0x18] sm:$0xff] %vm550_vm0, %v4500_v18 }
 0xa04   : > { %4502 = vst.msk [vmem:[%s537_s7 + $0x8] sm:$0xff] %vm550_vm0, %v4498_v20 }
 0xa05   : > { %5469 = shalt.err (!%p5466_p8)
}
 0xa06   : > { %s5470_s5 = scalar_lea.hbm %s6991_s27, 512  ;;  %s5474_s9 = scalar_lea.hbm %s7092_s19, 1024 }
 0xa07   : > { %p5471_p11 = scmp.ne.s32.totalorder %s6991_s27, %s5470_s5  ;;  %p5475_p13 = scmp.lt.u32.totalorder %s6991_s27, %s7092_s19 }
 0xa08   : > { %p5476_p1 = scmp.lt.u32.totalorder %s5474_s9, %s5470_s5  ;;  %p5478_p7 = scmp.lt.u32.totalorder %s5470_s5, %s6991_s27 }
 0xa09   : > { %p5472_p0 = pnand %p5471_p11, %p7093_p2 }
 0xa0a   : > { %p5477_p3 = por %p5476_p1, %p5475_p13 }
 0xa0b   : > { %p5473_p12 = pneg %p5472_p0 }
 0xa0c   : > { %p5479_p6 = por %p5478_p7, %p5477_p3 }
 0xa0e   : > { %p5480_p10 = pnand %p5479_p6, %p5473_p12 }
 0xa10   : > { %5483 = shalt.err (!%p5480_p10)
}
 0xa11   : > { %s5564_s7 = smov 128   ;;  %s5565_s28 = smov 8  }
 0xa12   : > { %5026 = dma.vmem_to_hbm [thread:$0]  (%p7093_p2), %s6983_s8, 512, %s6991_s27, %s4506_s20, %s5564_s7, %s5564_s7, %s5565_s28  }
 0xa13 PF: > { %s4534_s26 = sand.u32 1, %s5526_s21   ;;  %p7094_p5 = scmp.ne.s32.totalorder %s7078_s29, 0 }
 0xa14   : > { %p7095_p9 = scmp.ge.s32.totalorder %s5538_s24, 2  ;;  %s4535_s25 = scalar_lea.sflag [#allocation4], %s4534_s26 }
 0xa16   : > { %p5052_p4 = pnand %p7095_p9, %p7094_p5 }
 0xa18   : > { %5521 = dma.done.wait (!%p5052_p4), %s4535_s25, 512  }
 0xa19   : > { %5523 = vsyncadd (!%p5052_p4), %s4535_s25, 4294966784  ;;  %p30_p8 = scmp.ge.s32.totalorder %s5790_s13, 4   ;;  %s7096_s21 = smov %s5530_s22 }
 0xa1a   : > { %s7097_s22 = smov %s5534_s23  ;;  %s7098_s23 = smov %s5802_s11 }
 0xa1b   : > { %s7099_s24 = smov %s5790_s13  ;;  %32 = sbr.rel (!%p30_p8) target bundleno = 20 (0x14), region = 150 }
 0xa22   :  { %4540 = vsyncpa [#allocation3], 1 }
 0xa23   :  { %4542 = vsyncpa [#allocation3 + $0x1], 1 }
 0xa24   :  { %4543 = vsyncpa [#allocation6], 1 }
 0xa25   :  { %4545 = vsyncpa [#allocation6 + $0x1], 1 }
 0xa26   :  { %4546 = vsyncpa [#allocation9], 1 }
 0xa27   :  { %4547 = vsyncpa [#allocation12], 1 }
 0xa28   :  { %4548 = vsyncpa [#allocation4], 1 }
 0xa29   :  { %4550 = vsyncpa [#allocation4 + $0x1], 1 }

</bundles_post_ra>
